<compile_context>
chip_gen: v5e
topology: v5e:2x2
jax: 0.10.0
libtpu: 0.0.40
codegen_flags: <defaults>
</compile_context>

<pallas_src>
import functools
import math

import jax
import jax.numpy as jnp
from jax.experimental import pallas as pl
from jax.experimental.pallas import tpu as pltpu


# ------------------------------ helpers --------------------------------------
def _layernorm_f32(h, gamma, beta, eps=1e-5):
    """Custom LayerNorm: compute in float32 (matches LayerNorm(x.float()))."""
    hf = h.astype(jnp.float32)
    mu = jnp.mean(hf, axis=-1, keepdims=True)
    var = jnp.mean(jnp.square(hf - mu), axis=-1, keepdims=True)
    xhat = (hf - mu) * jax.lax.rsqrt(var + eps)
    return xhat * gamma.astype(jnp.float32) + beta.astype(jnp.float32)


def _gelu_exact(x):
    """nn.GELU() default = exact erf formulation."""
    return 0.5 * x * (1.0 + jax.lax.erf(x * (1.0 / math.sqrt(2.0))))


def _pick_tq(s):
    for t in (256, 128, 64, 32, 16, 8):
        if s % t == 0:
            return t
    return s


def _pick_heads_per_group(n_head, head_dim):
    # Prefer 512/256/128-lane groups (full-width stores, wide MXU N); fall back to
    # a single group spanning all heads (group width == D, always a legal block).
    for target in (512, 256, 128):
        hpg = target // head_dim
        if 1 <= hpg <= n_head and n_head % hpg == 0 and (hpg * head_dim) % 128 == 0:
            return hpg
    return n_head


def _pick_mlp_tile(n_mlp, d, cdt_bytes, resident_budget=18 * 1024 * 1024):
    # Keep w1/w2 VMEM-resident when small; otherwise stream 128-aligned chunks.
    if 2 * d * n_mlp * cdt_bytes <= resident_budget:
        return n_mlp
    for t in range(1024, 127, -128):
        if n_mlp % t == 0:
            return t
    return n_mlp


# --------------------- kernel A: LN1 + QKV + attention ------------------------
def _attn_kernel(
    x_ref, ln1_g_ref, ln1_b_ref, wq_ref, bq_ref, wk_ref, wv_ref, bv_ref,
    o_ref,
    h_scr, k_scr, v_scr, q_scr,
    *, tq, head_dim, heads_per_group, group_width, n_groups,
    compute_dtype, approx_recip,
):
    f32 = jnp.float32
    t = pl.program_id(1)   # query tile
    g = pl.program_id(2)   # head group

    # LN1(x) and K/V for ALL head groups: once per batch element, resident in VMEM
    # scratch for every (tile, group) step of this batch.  Full-width (D-wide
    # contraction) matmuls; the per-group scatter uses static, lane-aligned slices.
    @pl.when((t == 0) & (g == 0))
    def _():
        hc = _layernorm_f32(
            x_ref[0], ln1_g_ref[...], ln1_b_ref[...]).astype(compute_dtype)
        h_scr[...] = hc
        for g2 in range(n_groups):
            sl = slice(g2 * group_width, (g2 + 1) * group_width)
            kf = jnp.dot(hc, wk_ref[:, sl], preferred_element_type=f32)
            vf = (jnp.dot(hc, wv_ref[:, sl], preferred_element_type=f32)
                  + bv_ref[:, sl].astype(f32))
            k_scr[g2] = kf.astype(compute_dtype)
            v_scr[g2] = vf.astype(compute_dtype)

    # Q for this query tile (all groups, computed once per tile at g == 0).
    @pl.when(g == 0)
    def _():
        row0 = pl.multiple_of(t * tq, tq)
        h_tile = h_scr[pl.ds(row0, tq), :]                       # (tq, D)
        scale = head_dim ** -0.5   # folded (hd**-0.25 on q) * (hd**-0.25 on k)
        for g2 in range(n_groups):
            sl = slice(g2 * group_width, (g2 + 1) * group_width)
            qf = (jnp.dot(h_tile, wq_ref[:, sl], preferred_element_type=f32)
                  + bq_ref[:, sl].astype(f32))
            q_scr[g2] = (qf * scale).astype(compute_dtype)

    q_g = q_scr[g]                                               # (tq, gw)
    k_g = k_scr[g]                                               # (S,  gw)
    v_g = v_scr[g]                                               # (S,  gw)

    outs = []
    for j in range(heads_per_group):
        lo = j * head_dim
        hi = lo + head_dim
        # Scores without materializing k^T: contract head_dim of both operands.
        s = jax.lax.dot_general(
            q_g[:, lo:hi], k_g[:, lo:hi],
            dimension_numbers=(((1,), (1,)), ((), ())),
            preferred_element_type=f32)                          # (tq, S)
        s = s - jnp.max(s, axis=-1, keepdims=True)
        e = jnp.exp(s)
        denom = jnp.sum(e, axis=-1, keepdims=True)
        if approx_recip:
            p = e * pl.reciprocal(denom, approx=True)
        else:
            p = e / denom
        outs.append(jnp.dot(p.astype(compute_dtype), v_g[:, lo:hi],
                            preferred_element_type=f32))         # (tq, hd)
    o = outs[0] if len(outs) == 1 else jnp.concatenate(outs, axis=-1)
    o_ref[0] = o.astype(o_ref.dtype)                             # (tq, gw), lane-dense


# -------- kernel B: out-proj + residual + LN2 + MLP (n_mlp tiled) -------------
def _out_mlp_kernel(
    x_ref, a_ref, wo_ref, bo_ref, ln2_g_ref, ln2_b_ref,
    w1_ref, b1_ref, w2_ref, b2_ref,
    o_ref,
    y_scr, h2_scr, acc_scr,
    *, compute_dtype,
):
    f32 = jnp.float32
    c = pl.program_id(2)   # n_mlp chunk

    @pl.when(c == 0)
    def _():
        attn = (jnp.dot(a_ref[0].astype(compute_dtype), wo_ref[...],
                        preferred_element_type=f32) + bo_ref[...].astype(f32))
        y = x_ref[0].astype(f32) + attn                          # residual 1
        y_scr[...] = y
        h2_scr[...] = _layernorm_f32(
            y, ln2_g_ref[...], ln2_b_ref[...]).astype(compute_dtype)
        acc_scr[...] = jnp.zeros_like(acc_scr)

    m = (jnp.dot(h2_scr[...], w1_ref[...], preferred_element_type=f32)
         + b1_ref[...].astype(f32))
    m = _gelu_exact(m)                                           # exact erf GELU (f32)
    acc_scr[...] += jnp.dot(m.astype(compute_dtype), w2_ref[...],
                            preferred_element_type=f32)

    @pl.when(c == pl.num_programs(2) - 1)
    def _():
        o_ref[0] = (y_scr[...] + acc_scr[...]
                    + b2_ref[...].astype(f32)).astype(o_ref.dtype)   # residual 2


# ------------------------------ wrapper ---------------------------------------
def _residual_attention_block(x, params, n_head, *, tq, compute_dtype,
                              vmem_limit_bytes, approx_softmax_recip,
                              single_buffer_constants, heads_per_group, mlp_block):
    B, S, D = x.shape
    assert D % n_head == 0, "n_state must be divisible by n_head"
    hd = D // n_head
    if tq is None:
        tq = _pick_tq(S)
    assert S % tq == 0, "sequence length must be divisible by the query tile"
    T = S // tq

    f32 = jnp.float32
    cdt = jnp.dtype(compute_dtype)
    cdt_bytes = cdt.itemsize
    x_bytes = jnp.dtype(x.dtype).itemsize

    hpg = _pick_heads_per_group(n_head, hd) if heads_per_group is None else heads_per_group
    assert n_head % hpg == 0
    gw = hpg * hd
    assert gw % 128 == 0 or gw == D, "head-group width must be 128-aligned or full D"
    n_groups = D // gw

    n_mlp = params["w1"].shape[1]
    mlp_tile = _pick_mlp_tile(n_mlp, D, cdt_bytes) if mlp_block is None else mlp_block
    assert n_mlp % mlp_tile == 0
    assert mlp_tile % 128 == 0 or mlp_tile == n_mlp
    C = n_mlp // mlp_tile

    # Cast parameters once on the host side.
    wq = params["wq"].astype(cdt)
    wk = params["wk"].astype(cdt)
    wv = params["wv"].astype(cdt)
    wo = params["wo"].astype(cdt)
    w1 = params["w1"].astype(cdt)
    w2 = params["w2"].astype(cdt)
    bq = params["bq"].astype(f32)
    bv = params["bv"].astype(f32)
    bo = params["bo"].astype(f32)
    b1 = params["b1"].astype(f32)
    b2 = params["b2"].astype(f32)
    ln1_g = params["ln1_g"].astype(f32)
    ln1_b = params["ln1_b"].astype(f32)
    ln2_g = params["ln2_g"].astype(f32)
    ln2_b = params["ln2_b"].astype(f32)

    # Constant / rarely-changing blocks: single-buffer to halve weight residency.
    if single_buffer_constants:
        const_kwargs = dict(pipeline_mode=pl.Buffered(1))
    else:
        const_kwargs = {}

    def const_spec(shape, index_map):
        return pl.BlockSpec(shape, index_map, **const_kwargs)

    # Rough per-kernel VMEM need; raise the scoped limit only when required.
    w_bufs = 1 if single_buffer_constants else 2
    est_a = (3 * S * D * cdt_bytes                       # h / k / v scratch
             + n_groups * tq * gw * cdt_bytes            # q scratch
             + w_bufs * (S * D * x_bytes + 3 * D * D * cdt_bytes)
             + 2 * tq * gw * cdt_bytes)
    est_b = (w_bufs * D * D * cdt_bytes
             + 2 * 2 * D * mlp_tile * cdt_bytes
             + 2 * tq * D * (x_bytes + cdt_bytes)
             + 2 * tq * D * 4 + tq * D * cdt_bytes
             + 2 * tq * D * x_bytes)
    est = max(est_a, est_b)
    if vmem_limit_bytes is None and est > 12 * 1024 * 1024:
        lim = int(est * 1.4)
        try:
            cap = pltpu.get_tpu_info().vmem_capacity_bytes
            lim = min(lim, int(cap) * 3 // 4)
        except Exception:
            lim = min(lim, 96 * 1024 * 1024)
        vmem_limit_bytes = max(lim, 32 * 1024 * 1024)

    compiler_kwargs = {}
    if vmem_limit_bytes is not None:
        compiler_kwargs["vmem_limit_bytes"] = int(vmem_limit_bytes)

    # ---- kernel A: LN1 + QKV + attention, written directly into (B, S, D) ----
    cost_a = pl.CostEstimate(
        flops=int(6 * B * S * D * D + 4 * B * S * S * D),
        transcendentals=int(B * n_head * S * S),
        bytes_accessed=int(B * S * D * x_bytes + 3 * D * D * cdt_bytes
                           + B * S * D * cdt_bytes),
    )
    attn_out = pl.pallas_call(
        functools.partial(
            _attn_kernel, tq=tq, head_dim=hd, heads_per_group=hpg,
            group_width=gw, n_groups=n_groups, compute_dtype=cdt,
            approx_recip=approx_softmax_recip),
        out_shape=jax.ShapeDtypeStruct((B, S, D), cdt),
        grid_spec=pltpu.PrefetchScalarGridSpec(
            num_scalar_prefetch=0,
            grid=(B, T, n_groups),
            in_specs=[
                const_spec((1, S, D), lambda b, t, g: (b, 0, 0)),   # x (full seq)
                const_spec((1, D), lambda b, t, g: (0, 0)),         # ln1 gamma
                const_spec((1, D), lambda b, t, g: (0, 0)),         # ln1 beta
                const_spec((D, D), lambda b, t, g: (0, 0)),         # wq (full)
                const_spec((1, D), lambda b, t, g: (0, 0)),         # bq
                const_spec((D, D), lambda b, t, g: (0, 0)),         # wk (no bias)
                const_spec((D, D), lambda b, t, g: (0, 0)),         # wv
                const_spec((1, D), lambda b, t, g: (0, 0)),         # bv
            ],
            out_specs=pl.BlockSpec((1, tq, gw), lambda b, t, g: (b, t, g)),
            scratch_shapes=[
                pltpu.VMEM((S, D), cdt),               # LN1(x), full sequence
                pltpu.VMEM((n_groups, S, gw), cdt),    # K, all groups
                pltpu.VMEM((n_groups, S, gw), cdt),    # V, all groups
                pltpu.VMEM((n_groups, tq, gw), cdt),   # Q, current tile
            ],
        ),
        compiler_params=pltpu.CompilerParams(
            # t / g axes must stay "arbitrary": scratch init is gated on t==0 / g==0.
            dimension_semantics=("parallel", "arbitrary", "arbitrary"),
            **compiler_kwargs),
        cost_estimate=cost_a,
    )(x, ln1_g, ln1_b, wq, bq, wk, wv, bv)

    # ---- kernel B: out-proj + residual + LN2 + MLP (+ residual) ----
    cost_b = pl.CostEstimate(
        flops=int(2 * B * S * D * D + 4 * B * S * D * n_mlp),
        transcendentals=int(B * S * n_mlp),
        bytes_accessed=int(2 * B * S * D * x_bytes + B * S * D * cdt_bytes
                           + (D * D + 2 * D * n_mlp) * cdt_bytes),
    )
    out = pl.pallas_call(
        functools.partial(_out_mlp_kernel, compute_dtype=cdt),
        out_shape=jax.ShapeDtypeStruct((B, S, D), x.dtype),
        grid_spec=pltpu.PrefetchScalarGridSpec(
            num_scalar_prefetch=0,
            grid=(B, T, C),
            in_specs=[
                pl.BlockSpec((1, tq, D), lambda b, t, c: (b, t, 0)),      # x tile
                pl.BlockSpec((1, tq, D), lambda b, t, c: (b, t, 0)),      # attn tile
                const_spec((D, D), lambda b, t, c: (0, 0)),               # wo
                const_spec((1, D), lambda b, t, c: (0, 0)),               # bo
                const_spec((1, D), lambda b, t, c: (0, 0)),               # ln2 gamma
                const_spec((1, D), lambda b, t, c: (0, 0)),               # ln2 beta
                pl.BlockSpec((D, mlp_tile), lambda b, t, c: (0, c)),      # w1 chunk
                pl.BlockSpec((1, mlp_tile), lambda b, t, c: (0, c)),      # b1 chunk
                pl.BlockSpec((mlp_tile, D), lambda b, t, c: (c, 0)),      # w2 chunk
                const_spec((1, D), lambda b, t, c: (0, 0)),               # b2
            ],
            out_specs=pl.BlockSpec((1, tq, D), lambda b, t, c: (b, t, 0)),
            scratch_shapes=[
                pltpu.VMEM((tq, D), f32),   # y = x + out_proj(attn)
                pltpu.VMEM((tq, D), cdt),   # LN2(y)
                pltpu.VMEM((tq, D), f32),   # MLP accumulator
            ],
        ),
        compiler_params=pltpu.CompilerParams(
            dimension_semantics=("parallel", "parallel", "arbitrary"),
            **compiler_kwargs),
        cost_estimate=cost_b,
    )(x, attn_out, wo, bo, ln2_g, ln2_b, w1, b1, w2, b2)

    return jax.block_until_ready(out)


def residual_attention_block(x, params, n_head, *, tq=None,
                             compute_dtype=jnp.bfloat16, vmem_limit_bytes=None,
                             approx_softmax_recip=True, single_buffer_constants=True,
                             heads_per_group=None, mlp_block=None):
    kwargs = dict(tq=tq, compute_dtype=compute_dtype,
                  vmem_limit_bytes=vmem_limit_bytes,
                  approx_softmax_recip=approx_softmax_recip,
                  heads_per_group=heads_per_group, mlp_block=mlp_block)
    try:
        return _residual_attention_block(
            x, params, n_head, single_buffer_constants=single_buffer_constants, **kwargs)
    except Exception:
        if not single_buffer_constants:
            raise
        # pl.Buffered(1) rejected by this jax/libtpu: fall back to default
        # double-buffered constant blocks (correctness unchanged).
        return _residual_attention_block(
            x, params, n_head, single_buffer_constants=False, **kwargs)


# --------------------------- pure-JAX reference --------------------------------
def reference_block(x, p, n_head):
    B, S, D = x.shape
    hd = D // n_head
    scale = hd ** (-0.25)

    def ln(h, g, b):
        mu = jnp.mean(h, -1, keepdims=True)
        var = jnp.mean((h - mu) ** 2, -1, keepdims=True)
        return (h - mu) / jnp.sqrt(var + 1e-5) * g[0] + b[0]

    h = ln(x, p["ln1_g"], p["ln1_b"])
    q = h @ p["wq"] + p["bq"][0]
    k = h @ p["wk"]
    v = h @ p["wv"] + p["bv"][0]
    qh = q.reshape(B, S, n_head, hd).transpose(0, 2, 1, 3) * scale
    kh = k.reshape(B, S, n_head, hd).transpose(0, 2, 1, 3) * scale
    vh = v.reshape(B, S, n_head, hd).transpose(0, 2, 1, 3)
    s = jnp.einsum("bhqd,bhkd->bhqk", qh, kh)
    w = jax.nn.softmax(s, axis=-1)
    a = jnp.einsum("bhqk,bhkd->bhqd", w, vh).transpose(0, 2, 1, 3).reshape(B, S, D)
    x = x + a @ p["wo"] + p["bo"][0]

    h2 = ln(x, p["ln2_g"], p["ln2_b"])
    m = h2 @ p["w1"] + p["b1"][0]
    m = 0.5 * m * (1.0 + jax.lax.erf(m / jnp.sqrt(2.0)))
    m = m @ p["w2"] + p["b2"][0]
    return x + m


def make_params(key, D, n_mlp, sd=0.02):
    ks = jax.random.split(key, 12)
    return {
        "ln1_g": jnp.ones((1, D), jnp.float32),
        "ln1_b": jnp.zeros((1, D), jnp.float32),
        "wq": sd * jax.random.normal(ks[0], (D, D), jnp.float32),
        "bq": sd * jax.random.normal(ks[1], (1, D), jnp.float32),
        "wk": sd * jax.random.normal(ks[2], (D, D), jnp.float32),
        "wv": sd * jax.random.normal(ks[3], (D, D), jnp.float32),
        "bv": sd * jax.random.normal(ks[4], (1, D), jnp.float32),
        "wo": sd * jax.random.normal(ks[5], (D, D), jnp.float32),
        "bo": sd * jax.random.normal(ks[6], (1, D), jnp.float32),
        "ln2_g": jnp.ones((1, D), jnp.float32),
        "ln2_b": jnp.zeros((1, D), jnp.float32),
        "w1": sd * jax.random.normal(ks[7], (D, n_mlp), jnp.float32),
        "b1": sd * jax.random.normal(ks[8], (1, n_mlp), jnp.float32),
        "w2": sd * jax.random.normal(ks[9], (n_mlp, D), jnp.float32),
        "b2": sd * jax.random.normal(ks[10], (1, D), jnp.float32),
    }


# --------------------------------- main -----------------------------------------
if __name__ == "__main__":
    key = jax.random.PRNGKey(0)
    k_par, k_x, k_par2, k_x2 = jax.random.split(key, 4)

    # Base config: (batch, n_ctx, n_state) = (2, 8, 64), 4 heads, n_mlp = 4 * n_state.
    B, S, D = 2, 8, 64
    n_head = 4
    params = make_params(k_par, D, 4 * D)
    x = jax.random.normal(k_x, (B, S, D), jnp.float32)
    ref = reference_block(x, params, n_head)

    # 1) f32 matmul-operand path (tight tolerance; approx-reciprocal softmax only).
    out_f32 = residual_attention_block(x, params, n_head, compute_dtype=jnp.float32)
    out_f32 = jax.block_until_ready(out_f32)
    assert out_f32.shape == (B, S, D)
    err = float(jnp.max(jnp.abs(out_f32 - ref)))
    assert jnp.allclose(out_f32, ref, atol=1e-3, rtol=1e-3), f"f32 max abs err {err}"

    # 2) Default path: bf16 matmul operands, f32 accumulation.
    out_bf16 = residual_attention_block(x, params, n_head)
    out_bf16 = jax.block_until_ready(out_bf16)
    err_bf = float(jnp.max(jnp.abs(out_bf16 - ref)))
    assert jnp.allclose(out_bf16, ref, atol=2e-2, rtol=2e-2), \
        f"bf16 max abs err {err_bf}"

    # 3) Coverage config exercising multiple query tiles (T=2), multiple head
    #    groups (n_groups=2) and the streamed / accumulated MLP path (C=2).
    B2, S2, D2, n_head2 = 2, 16, 256, 8
    params2 = make_params(k_par2, D2, 4 * D2)
    x2 = jax.random.normal(k_x2, (B2, S2, D2), jnp.float32)
    ref2 = reference_block(x2, params2, n_head2)
    out2 = residual_attention_block(x2, params2, n_head2, tq=8,
                                    heads_per_group=4, mlp_block=512)
    out2 = jax.block_until_ready(out2)
    err2 = float(jnp.max(jnp.abs(out2 - ref2)))
    assert jnp.allclose(out2, ref2, atol=2e-2, rtol=2e-2), \
        f"coverage max abs err {err2}"

    print("KERNEL_OK")
</pallas_src>

<mosaic_0001>
module attributes {stable_mosaic.version = 11 : i64} {
  func.func @_attn_kernel(%arg0: i32, %arg1: i32, %arg2: i32, %arg3: memref<1x8x64xf32, #tpu.memory_space<vmem>>, %arg4: memref<1x64xf32, #tpu.memory_space<vmem>>, %arg5: memref<1x64xf32, #tpu.memory_space<vmem>>, %arg6: memref<64x64xf32, #tpu.memory_space<vmem>>, %arg7: memref<1x64xf32, #tpu.memory_space<vmem>>, %arg8: memref<64x64xf32, #tpu.memory_space<vmem>>, %arg9: memref<64x64xf32, #tpu.memory_space<vmem>>, %arg10: memref<1x64xf32, #tpu.memory_space<vmem>>, %arg11: memref<1x8x64xf32, #tpu.memory_space<vmem>>, %arg12: memref<8x64xf32, #tpu.memory_space<vmem>>, %arg13: memref<1x8x64xf32, #tpu.memory_space<vmem>>, %arg14: memref<1x8x64xf32, #tpu.memory_space<vmem>>, %arg15: memref<1x8x64xf32, #tpu.memory_space<vmem>>) attributes {dimension_semantics = [#tpu.dimension_semantics<parallel>, #tpu.dimension_semantics<arbitrary>, #tpu.dimension_semantics<arbitrary>], iteration_bounds = array<i64: 2, 1, 1>, scalar_prefetch = 0 : i64, scratch_operands = 4 : i64, tpu.core_type = #tpu.core_type<tc>, window_params = [{pipeline_mode = #tpu.pipeline_mode<synchronous>, transform_indices = @transform_0, window_bounds = array<i64: 1, 8, 64>}, {pipeline_mode = #tpu.pipeline_mode<synchronous>, transform_indices = @transform_1, window_bounds = array<i64: 1, 64>}, {pipeline_mode = #tpu.pipeline_mode<synchronous>, transform_indices = @transform_2, window_bounds = array<i64: 1, 64>}, {pipeline_mode = #tpu.pipeline_mode<synchronous>, transform_indices = @transform_3, window_bounds = array<i64: 64, 64>}, {pipeline_mode = #tpu.pipeline_mode<synchronous>, transform_indices = @transform_4, window_bounds = array<i64: 1, 64>}, {pipeline_mode = #tpu.pipeline_mode<synchronous>, transform_indices = @transform_5, window_bounds = array<i64: 64, 64>}, {pipeline_mode = #tpu.pipeline_mode<synchronous>, transform_indices = @transform_6, window_bounds = array<i64: 64, 64>}, {pipeline_mode = #tpu.pipeline_mode<synchronous>, transform_indices = @transform_7, window_bounds = array<i64: 1, 64>}, {transform_indices = @transform_8, window_bounds = array<i64: 1, 8, 64>}]} {
    %c0_i32 = arith.constant 0 : i32
    %0 = arith.cmpi eq, %arg1, %c0_i32 : i32
    %c0_i32_0 = arith.constant 0 : i32
    %1 = arith.cmpi eq, %arg2, %c0_i32_0 : i32
    %2 = arith.andi %0, %1 : i1
    %3 = arith.extui %2 : i1 to i32
    %c0_i32_1 = arith.constant 0 : i32
    %4 = arith.cmpi ne, %3, %c0_i32_1 : i32
    scf.if %4 {
      %c0_27 = arith.constant 0 : index
      %c0_28 = arith.constant 0 : index
      %c0_29 = arith.constant 0 : index
      %81 = vector.load %arg3[%c0_27, %c0_28, %c0_29] : memref<1x8x64xf32, #tpu.memory_space<vmem>>, vector<1x8x64xf32>
      %82 = vector.shape_cast %81 : vector<1x8x64xf32> to vector<8x64xf32>
      %c0_30 = arith.constant 0 : index
      %c0_31 = arith.constant 0 : index
      %83 = vector.load %arg4[%c0_30, %c0_31] : memref<1x64xf32, #tpu.memory_space<vmem>>, vector<1x64xf32>
      %c0_32 = arith.constant 0 : index
      %c0_33 = arith.constant 0 : index
      %84 = vector.load %arg5[%c0_32, %c0_33] : memref<1x64xf32, #tpu.memory_space<vmem>>, vector<1x64xf32>
      %cst_34 = arith.constant dense<0.000000e+00> : vector<8xf32>
      %85 = vector.multi_reduction <add>, %82, %cst_34 [1] : vector<8x64xf32> to vector<8xf32>
      %86 = vector.shape_cast %85 : vector<8xf32> to vector<8x1xf32>
      %cst_35 = arith.constant 6.400000e+01 : f32
      %87 = vector.broadcast %cst_35 : f32 to vector<8x1xf32>
      %88 = arith.divf %86, %87 : vector<8x1xf32>
      %89 = vector.broadcast %88 : vector<8x1xf32> to vector<8x64xf32>
      %90 = arith.subf %82, %89 : vector<8x64xf32>
      %91 = arith.mulf %90, %90 : vector<8x64xf32>
      %cst_36 = arith.constant dense<0.000000e+00> : vector<8xf32>
      %92 = vector.multi_reduction <add>, %91, %cst_36 [1] : vector<8x64xf32> to vector<8xf32>
      %93 = vector.shape_cast %92 : vector<8xf32> to vector<8x1xf32>
      %cst_37 = arith.constant 6.400000e+01 : f32
      %94 = vector.broadcast %cst_37 : f32 to vector<8x1xf32>
      %95 = arith.divf %93, %94 : vector<8x1xf32>
      %96 = vector.broadcast %88 : vector<8x1xf32> to vector<8x64xf32>
      %97 = arith.subf %82, %96 : vector<8x64xf32>
      %cst_38 = arith.constant 9.99999974E-6 : f32
      %98 = vector.broadcast %cst_38 : f32 to vector<8x1xf32>
      %99 = arith.addf %95, %98 : vector<8x1xf32>
      %100 = math.rsqrt %99 : vector<8x1xf32>
      %101 = vector.broadcast %100 : vector<8x1xf32> to vector<8x64xf32>
      %102 = arith.mulf %97, %101 : vector<8x64xf32>
      %103 = vector.broadcast %83 : vector<1x64xf32> to vector<8x64xf32>
      %104 = arith.mulf %102, %103 : vector<8x64xf32>
      %105 = vector.broadcast %84 : vector<1x64xf32> to vector<8x64xf32>
      %106 = arith.addf %104, %105 : vector<8x64xf32>
      %c0_39 = arith.constant 0 : index
      %c0_40 = arith.constant 0 : index
      %107 = vector.load %arg12[%c0_39, %c0_40] : memref<8x64xf32, #tpu.memory_space<vmem>>, vector<8x64xf32>
      tpu.vector_store %arg12[%c0_39, %c0_40], %106 {strides = array<i32>} : memref<8x64xf32, #tpu.memory_space<vmem>>, vector<8x64xf32>,
      %c0_41 = arith.constant 0 : index
      %c0_42 = arith.constant 0 : index
      %108 = vector.load %arg8[%c0_41, %c0_42] : memref<64x64xf32, #tpu.memory_space<vmem>>, vector<64x64xf32>
      %cst_43 = arith.constant dense<0.000000e+00> : vector<8x64xf32>
      %109 = tpu.matmul %106, %108, %cst_43 {dimension_numbers = #tpu.dot_dimension_numbers<[1], [0], [0], [1], [0, 0, 1, 1], [], []>} : vector<8x64xf32>, vector<64x64xf32>, vector<8x64xf32> -> vector<8x64xf32>
      %c0_44 = arith.constant 0 : index
      %c0_45 = arith.constant 0 : index
      %110 = vector.load %arg9[%c0_44, %c0_45] : memref<64x64xf32, #tpu.memory_space<vmem>>, vector<64x64xf32>
      %cst_46 = arith.constant dense<0.000000e+00> : vector<8x64xf32>
      %111 = tpu.matmul %106, %110, %cst_46 {dimension_numbers = #tpu.dot_dimension_numbers<[1], [0], [0], [1], [0, 0, 1, 1], [], []>} : vector<8x64xf32>, vector<64x64xf32>, vector<8x64xf32> -> vector<8x64xf32>
      %c0_47 = arith.constant 0 : index
      %c0_48 = arith.constant 0 : index
      %112 = vector.load %arg10[%c0_47, %c0_48] : memref<1x64xf32, #tpu.memory_space<vmem>>, vector<1x64xf32>
      %113 = vector.broadcast %112 : vector<1x64xf32> to vector<8x64xf32>
      %114 = arith.addf %111, %113 : vector<8x64xf32>
      %c0_49 = arith.constant 0 : index
      %c0_50 = arith.constant 0 : index
      %c0_51 = arith.constant 0 : index
      %115 = vector.load %arg13[%c0_49, %c0_50, %c0_51] : memref<1x8x64xf32, #tpu.memory_space<vmem>>, vector<1x8x64xf32>
      %116 = vector.shape_cast %115 : vector<1x8x64xf32> to vector<8x64xf32>
      %117 = vector.shape_cast %109 : vector<8x64xf32> to vector<1x8x64xf32>
      tpu.vector_store %arg13[%c0_49, %c0_50, %c0_51], %117 {strides = array<i32>} : memref<1x8x64xf32, #tpu.memory_space<vmem>>, vector<1x8x64xf32>,
      %c0_52 = arith.constant 0 : index
      %c0_53 = arith.constant 0 : index
      %c0_54 = arith.constant 0 : index
      %118 = vector.load %arg14[%c0_52, %c0_53, %c0_54] : memref<1x8x64xf32, #tpu.memory_space<vmem>>, vector<1x8x64xf32>
      %119 = vector.shape_cast %118 : vector<1x8x64xf32> to vector<8x64xf32>
      %120 = vector.shape_cast %114 : vector<8x64xf32> to vector<1x8x64xf32>
      tpu.vector_store %arg14[%c0_52, %c0_53, %c0_54], %120 {strides = array<i32>} : memref<1x8x64xf32, #tpu.memory_space<vmem>>, vector<1x8x64xf32>,
    } else {
    }
    %c0_i32_2 = arith.constant 0 : i32
    %5 = arith.cmpi eq, %arg2, %c0_i32_2 : i32
    %6 = arith.extui %5 : i1 to i32
    %c0_i32_3 = arith.constant 0 : i32
    %7 = arith.cmpi ne, %6, %c0_i32_3 : i32
    scf.if %7 {
      %c8_i32 = arith.constant 8 : i32
      %81 = arith.muli %arg1, %c8_i32 : i32
      %82 = tpu.assume_multiple %81, 8 : i32
      %83 = arith.index_cast %82 : i32 to index
      %c0_27 = arith.constant 0 : index
      %84 = vector.load %arg12[%83, %c0_27] : memref<8x64xf32, #tpu.memory_space<vmem>>, vector<8x64xf32>
      %c0_28 = arith.constant 0 : index
      %c0_29 = arith.constant 0 : index
      %85 = vector.load %arg6[%c0_28, %c0_29] : memref<64x64xf32, #tpu.memory_space<vmem>>, vector<64x64xf32>
      %cst_30 = arith.constant dense<0.000000e+00> : vector<8x64xf32>
      %86 = tpu.matmul %84, %85, %cst_30 {dimension_numbers = #tpu.dot_dimension_numbers<[1], [0], [0], [1], [0, 0, 1, 1], [], []>} : vector<8x64xf32>, vector<64x64xf32>, vector<8x64xf32> -> vector<8x64xf32>
      %c0_31 = arith.constant 0 : index
      %c0_32 = arith.constant 0 : index
      %87 = vector.load %arg7[%c0_31, %c0_32] : memref<1x64xf32, #tpu.memory_space<vmem>>, vector<1x64xf32>
      %88 = vector.broadcast %87 : vector<1x64xf32> to vector<8x64xf32>
      %89 = arith.addf %86, %88 : vector<8x64xf32>
      %cst_33 = arith.constant 2.500000e-01 : f32
      %90 = vector.broadcast %cst_33 : f32 to vector<8x64xf32>
      %91 = arith.mulf %89, %90 : vector<8x64xf32>
      %c0_34 = arith.constant 0 : index
      %c0_35 = arith.constant 0 : index
      %c0_36 = arith.constant 0 : index
      %92 = vector.load %arg15[%c0_34, %c0_35, %c0_36] : memref<1x8x64xf32, #tpu.memory_space<vmem>>, vector<1x8x64xf32>
      %93 = vector.shape_cast %92 : vector<1x8x64xf32> to vector<8x64xf32>
      %94 = vector.shape_cast %91 : vector<8x64xf32> to vector<1x8x64xf32>
      tpu.vector_store %arg15[%c0_34, %c0_35, %c0_36], %94 {strides = array<i32>} : memref<1x8x64xf32, #tpu.memory_space<vmem>>, vector<1x8x64xf32>,
    } else {
    }
    %8 = arith.index_cast %arg2 : i32 to index
    %c0 = arith.constant 0 : index
    %c0_4 = arith.constant 0 : index
    %9 = vector.load %arg15[%8, %c0, %c0_4] : memref<1x8x64xf32, #tpu.memory_space<vmem>>, vector<1x8x64xf32>
    %10 = vector.shape_cast %9 : vector<1x8x64xf32> to vector<8x64xf32>
    %11 = arith.index_cast %arg2 : i32 to index
    %c0_5 = arith.constant 0 : index
    %c0_6 = arith.constant 0 : index
    %12 = vector.load %arg13[%11, %c0_5, %c0_6] : memref<1x8x64xf32, #tpu.memory_space<vmem>>, vector<1x8x64xf32>
    %13 = vector.shape_cast %12 : vector<1x8x64xf32> to vector<8x64xf32>
    %14 = arith.index_cast %arg2 : i32 to index
    %c0_7 = arith.constant 0 : index
    %c0_8 = arith.constant 0 : index
    %15 = vector.load %arg14[%14, %c0_7, %c0_8] : memref<1x8x64xf32, #tpu.memory_space<vmem>>, vector<1x8x64xf32>
    %16 = vector.shape_cast %15 : vector<1x8x64xf32> to vector<8x64xf32>
    %17 = vector.extract_strided_slice %10 {offsets = [0, 0], sizes = [8, 16], strides = [1, 1]} : vector<8x64xf32> to vector<8x16xf32>
    %18 = vector.extract_strided_slice %13 {offsets = [0, 0], sizes = [8, 16], strides = [1, 1]} : vector<8x64xf32> to vector<8x16xf32>
    %cst = arith.constant dense<0.000000e+00> : vector<8x8xf32>
    %19 = tpu.matmul %17, %18, %cst {dimension_numbers = #tpu.dot_dimension_numbers<[1], [1], [0], [0], [0, 0, 1, 0], [], []>} : vector<8x16xf32>, vector<8x16xf32>, vector<8x8xf32> -> vector<8x8xf32>
    %cst_9 = arith.constant dense<0xFF800000> : vector<8xf32>
    %20 = vector.multi_reduction <maximumf>, %19, %cst_9 [1] : vector<8x8xf32> to vector<8xf32>
    %21 = vector.shape_cast %20 : vector<8xf32> to vector<8x1xf32>
    %22 = vector.broadcast %21 : vector<8x1xf32> to vector<8x8xf32>
    %23 = arith.subf %19, %22 : vector<8x8xf32>
    %24 = math.exp %23 : vector<8x8xf32>
    %cst_10 = arith.constant dense<0.000000e+00> : vector<8xf32>
    %25 = vector.multi_reduction <add>, %24, %cst_10 [1] : vector<8x8xf32> to vector<8xf32>
    %26 = vector.shape_cast %25 : vector<8xf32> to vector<8x1xf32>
    %27 = tpu.reciprocal %26 {approx = true} : vector<8x1xf32> -> vector<8x1xf32>
    %28 = vector.broadcast %27 : vector<8x1xf32> to vector<8x8xf32>
    %29 = arith.mulf %24, %28 : vector<8x8xf32>
    %30 = vector.extract_strided_slice %16 {offsets = [0, 0], sizes = [8, 16], strides = [1, 1]} : vector<8x64xf32> to vector<8x16xf32>
    %cst_11 = arith.constant dense<0.000000e+00> : vector<8x16xf32>
    %31 = tpu.matmul %29, %30, %cst_11 {dimension_numbers = #tpu.dot_dimension_numbers<[1], [0], [0], [1], [0, 0, 1, 1], [], []>} : vector<8x8xf32>, vector<8x16xf32>, vector<8x16xf32> -> vector<8x16xf32>
    %32 = vector.extract_strided_slice %10 {offsets = [0, 16], sizes = [8, 16], strides = [1, 1]} : vector<8x64xf32> to vector<8x16xf32>
    %33 = vector.extract_strided_slice %13 {offsets = [0, 16], sizes = [8, 16], strides = [1, 1]} : vector<8x64xf32> to vector<8x16xf32>
    %cst_12 = arith.constant dense<0.000000e+00> : vector<8x8xf32>
    %34 = tpu.matmul %32, %33, %cst_12 {dimension_numbers = #tpu.dot_dimension_numbers<[1], [1], [0], [0], [0, 0, 1, 0], [], []>} : vector<8x16xf32>, vector<8x16xf32>, vector<8x8xf32> -> vector<8x8xf32>
    %cst_13 = arith.constant dense<0xFF800000> : vector<8xf32>
    %35 = vector.multi_reduction <maximumf>, %34, %cst_13 [1] : vector<8x8xf32> to vector<8xf32>
    %36 = vector.shape_cast %35 : vector<8xf32> to vector<8x1xf32>
    %37 = vector.broadcast %36 : vector<8x1xf32> to vector<8x8xf32>
    %38 = arith.subf %34, %37 : vector<8x8xf32>
    %39 = math.exp %38 : vector<8x8xf32>
    %cst_14 = arith.constant dense<0.000000e+00> : vector<8xf32>
    %40 = vector.multi_reduction <add>, %39, %cst_14 [1] : vector<8x8xf32> to vector<8xf32>
    %41 = vector.shape_cast %40 : vector<8xf32> to vector<8x1xf32>
    %42 = tpu.reciprocal %41 {approx = true} : vector<8x1xf32> -> vector<8x1xf32>
    %43 = vector.broadcast %42 : vector<8x1xf32> to vector<8x8xf32>
    %44 = arith.mulf %39, %43 : vector<8x8xf32>
    %45 = vector.extract_strided_slice %16 {offsets = [0, 16], sizes = [8, 16], strides = [1, 1]} : vector<8x64xf32> to vector<8x16xf32>
    %cst_15 = arith.constant dense<0.000000e+00> : vector<8x16xf32>
    %46 = tpu.matmul %44, %45, %cst_15 {dimension_numbers = #tpu.dot_dimension_numbers<[1], [0], [0], [1], [0, 0, 1, 1], [], []>} : vector<8x8xf32>, vector<8x16xf32>, vector<8x16xf32> -> vector<8x16xf32>
    %47 = vector.extract_strided_slice %10 {offsets = [0, 32], sizes = [8, 16], strides = [1, 1]} : vector<8x64xf32> to vector<8x16xf32>
    %48 = vector.extract_strided_slice %13 {offsets = [0, 32], sizes = [8, 16], strides = [1, 1]} : vector<8x64xf32> to vector<8x16xf32>
    %cst_16 = arith.constant dense<0.000000e+00> : vector<8x8xf32>
    %49 = tpu.matmul %47, %48, %cst_16 {dimension_numbers = #tpu.dot_dimension_numbers<[1], [1], [0], [0], [0, 0, 1, 0], [], []>} : vector<8x16xf32>, vector<8x16xf32>, vector<8x8xf32> -> vector<8x8xf32>
    %cst_17 = arith.constant dense<0xFF800000> : vector<8xf32>
    %50 = vector.multi_reduction <maximumf>, %49, %cst_17 [1] : vector<8x8xf32> to vector<8xf32>
    %51 = vector.shape_cast %50 : vector<8xf32> to vector<8x1xf32>
    %52 = vector.broadcast %51 : vector<8x1xf32> to vector<8x8xf32>
    %53 = arith.subf %49, %52 : vector<8x8xf32>
    %54 = math.exp %53 : vector<8x8xf32>
    %cst_18 = arith.constant dense<0.000000e+00> : vector<8xf32>
    %55 = vector.multi_reduction <add>, %54, %cst_18 [1] : vector<8x8xf32> to vector<8xf32>
    %56 = vector.shape_cast %55 : vector<8xf32> to vector<8x1xf32>
    %57 = tpu.reciprocal %56 {approx = true} : vector<8x1xf32> -> vector<8x1xf32>
    %58 = vector.broadcast %57 : vector<8x1xf32> to vector<8x8xf32>
    %59 = arith.mulf %54, %58 : vector<8x8xf32>
    %60 = vector.extract_strided_slice %16 {offsets = [0, 32], sizes = [8, 16], strides = [1, 1]} : vector<8x64xf32> to vector<8x16xf32>
    %cst_19 = arith.constant dense<0.000000e+00> : vector<8x16xf32>
    %61 = tpu.matmul %59, %60, %cst_19 {dimension_numbers = #tpu.dot_dimension_numbers<[1], [0], [0], [1], [0, 0, 1, 1], [], []>} : vector<8x8xf32>, vector<8x16xf32>, vector<8x16xf32> -> vector<8x16xf32>
    %62 = vector.extract_strided_slice %10 {offsets = [0, 48], sizes = [8, 16], strides = [1, 1]} : vector<8x64xf32> to vector<8x16xf32>
    %63 = vector.extract_strided_slice %13 {offsets = [0, 48], sizes = [8, 16], strides = [1, 1]} : vector<8x64xf32> to vector<8x16xf32>
    %cst_20 = arith.constant dense<0.000000e+00> : vector<8x8xf32>
    %64 = tpu.matmul %62, %63, %cst_20 {dimension_numbers = #tpu.dot_dimension_numbers<[1], [1], [0], [0], [0, 0, 1, 0], [], []>} : vector<8x16xf32>, vector<8x16xf32>, vector<8x8xf32> -> vector<8x8xf32>
    %cst_21 = arith.constant dense<0xFF800000> : vector<8xf32>
    %65 = vector.multi_reduction <maximumf>, %64, %cst_21 [1] : vector<8x8xf32> to vector<8xf32>
    %66 = vector.shape_cast %65 : vector<8xf32> to vector<8x1xf32>
    %67 = vector.broadcast %66 : vector<8x1xf32> to vector<8x8xf32>
    %68 = arith.subf %64, %67 : vector<8x8xf32>
    %69 = math.exp %68 : vector<8x8xf32>
    %cst_22 = arith.constant dense<0.000000e+00> : vector<8xf32>
    %70 = vector.multi_reduction <add>, %69, %cst_22 [1] : vector<8x8xf32> to vector<8xf32>
    %71 = vector.shape_cast %70 : vector<8xf32> to vector<8x1xf32>
    %72 = tpu.reciprocal %71 {approx = true} : vector<8x1xf32> -> vector<8x1xf32>
    %73 = vector.broadcast %72 : vector<8x1xf32> to vector<8x8xf32>
    %74 = arith.mulf %69, %73 : vector<8x8xf32>
    %75 = vector.extract_strided_slice %16 {offsets = [0, 48], sizes = [8, 16], strides = [1, 1]} : vector<8x64xf32> to vector<8x16xf32>
    %cst_23 = arith.constant dense<0.000000e+00> : vector<8x16xf32>
    %76 = tpu.matmul %74, %75, %cst_23 {dimension_numbers = #tpu.dot_dimension_numbers<[1], [0], [0], [1], [0, 0, 1, 1], [], []>} : vector<8x8xf32>, vector<8x16xf32>, vector<8x16xf32> -> vector<8x16xf32>
    %77 = tpu.concatenate %31, %46, %61, %76 in 1 : vector<8x16xf32>, vector<8x16xf32>, vector<8x16xf32>, vector<8x16xf32> -> vector<8x64xf32>
    %c0_24 = arith.constant 0 : index
    %c0_25 = arith.constant 0 : index
    %c0_26 = arith.constant 0 : index
    %78 = vector.load %arg11[%c0_24, %c0_25, %c0_26] : memref<1x8x64xf32, #tpu.memory_space<vmem>>, vector<1x8x64xf32>
    %79 = vector.shape_cast %78 : vector<1x8x64xf32> to vector<8x64xf32>
    %80 = vector.shape_cast %77 : vector<8x64xf32> to vector<1x8x64xf32>
    tpu.vector_store %arg11[%c0_24, %c0_25, %c0_26], %80 {strides = array<i32>} : memref<1x8x64xf32, #tpu.memory_space<vmem>>, vector<1x8x64xf32>,
    return
  }
  func.func @transform_0(%arg0: i32, %arg1: i32, %arg2: i32) -> (i32, i32, i32) {
    %c0_i32 = arith.constant 0 : i32
    %c0_i32_0 = arith.constant 0 : i32
    %c0_i32_1 = arith.constant 0 : i32
    return %arg0, %c0_i32, %c0_i32_0 : i32, i32, i32
  }
  func.func @transform_1(%arg0: i32, %arg1: i32, %arg2: i32) -> (i32, i32) {
    %c0_i32 = arith.constant 0 : i32
    %c0_i32_0 = arith.constant 0 : i32
    %c0_i32_1 = arith.constant 0 : i32
    return %c0_i32, %c0_i32_0 : i32, i32
  }
  func.func @transform_2(%arg0: i32, %arg1: i32, %arg2: i32) -> (i32, i32) {
    %c0_i32 = arith.constant 0 : i32
    %c0_i32_0 = arith.constant 0 : i32
    %c0_i32_1 = arith.constant 0 : i32
    return %c0_i32, %c0_i32_0 : i32, i32
  }
  func.func @transform_3(%arg0: i32, %arg1: i32, %arg2: i32) -> (i32, i32) {
    %c0_i32 = arith.constant 0 : i32
    %c0_i32_0 = arith.constant 0 : i32
    %c0_i32_1 = arith.constant 0 : i32
    return %c0_i32, %c0_i32_0 : i32, i32
  }
  func.func @transform_4(%arg0: i32, %arg1: i32, %arg2: i32) -> (i32, i32) {
    %c0_i32 = arith.constant 0 : i32
    %c0_i32_0 = arith.constant 0 : i32
    %c0_i32_1 = arith.constant 0 : i32
    return %c0_i32, %c0_i32_0 : i32, i32
  }
  func.func @transform_5(%arg0: i32, %arg1: i32, %arg2: i32) -> (i32, i32) {
    %c0_i32 = arith.constant 0 : i32
    %c0_i32_0 = arith.constant 0 : i32
    %c0_i32_1 = arith.constant 0 : i32
    return %c0_i32, %c0_i32_0 : i32, i32
  }
  func.func @transform_6(%arg0: i32, %arg1: i32, %arg2: i32) -> (i32, i32) {
    %c0_i32 = arith.constant 0 : i32
    %c0_i32_0 = arith.constant 0 : i32
    %c0_i32_1 = arith.constant 0 : i32
    return %c0_i32, %c0_i32_0 : i32, i32
  }
  func.func @transform_7(%arg0: i32, %arg1: i32, %arg2: i32) -> (i32, i32) {
    %c0_i32 = arith.constant 0 : i32
    %c0_i32_0 = arith.constant 0 : i32
    %c0_i32_1 = arith.constant 0 : i32
    return %c0_i32, %c0_i32_0 : i32, i32
  }
  func.func @transform_8(%arg0: i32, %arg1: i32, %arg2: i32) -> (i32, i32, i32) {
    %c0_i32 = arith.constant 0 : i32
    return %arg0, %arg1, %arg2 : i32, i32, i32
  }
}

module attributes {stable_mosaic.version = 11 : i64} {
  func.func @_attn_kernel(%arg0: i32, %arg1: i32, %arg2: i32, %arg3: memref<1x8x64xf32, #tpu.memory_space<vmem>>, %arg4: memref<1x64xf32, #tpu.memory_space<vmem>>, %arg5: memref<1x64xf32, #tpu.memory_space<vmem>>, %arg6: memref<64x64xf32, #tpu.memory_space<vmem>>, %arg7: memref<1x64xf32, #tpu.memory_space<vmem>>, %arg8: memref<64x64xf32, #tpu.memory_space<vmem>>, %arg9: memref<64x64xf32, #tpu.memory_space<vmem>>, %arg10: memref<1x64xf32, #tpu.memory_space<vmem>>, %arg11: memref<1x8x64xf32, #tpu.memory_space<vmem>>, %arg12: memref<8x64xf32, #tpu.memory_space<vmem>>, %arg13: memref<1x8x64xf32, #tpu.memory_space<vmem>>, %arg14: memref<1x8x64xf32, #tpu.memory_space<vmem>>, %arg15: memref<1x8x64xf32, #tpu.memory_space<vmem>>) attributes {dimension_semantics = [#tpu.dimension_semantics<parallel>, #tpu.dimension_semantics<arbitrary>, #tpu.dimension_semantics<arbitrary>], iteration_bounds = array<i64: 2, 1, 1>, scalar_prefetch = 0 : i64, scratch_operands = 4 : i64, tpu.core_type = #tpu.core_type<tc>, window_params = [{transform_indices = @transform_0, window_bounds = array<i64: 1, 8, 64>}, {pipeline_mode = #tpu.pipeline_mode<synchronous>, transform_indices = @transform_1, window_bounds = array<i64: 1, 64>}, {pipeline_mode = #tpu.pipeline_mode<synchronous>, transform_indices = @transform_2, window_bounds = array<i64: 1, 64>}, {pipeline_mode = #tpu.pipeline_mode<synchronous>, transform_indices = @transform_3, window_bounds = array<i64: 64, 64>}, {pipeline_mode = #tpu.pipeline_mode<synchronous>, transform_indices = @transform_4, window_bounds = array<i64: 1, 64>}, {pipeline_mode = #tpu.pipeline_mode<synchronous>, transform_indices = @transform_5, window_bounds = array<i64: 64, 64>}, {pipeline_mode = #tpu.pipeline_mode<synchronous>, transform_indices = @transform_6, window_bounds = array<i64: 64, 64>}, {pipeline_mode = #tpu.pipeline_mode<synchronous>, transform_indices = @transform_7, window_bounds = array<i64: 1, 64>}, {transform_indices = @transform_8, window_bounds = array<i64: 1, 8, 64>}]} {
    %c0_i32 = arith.constant 0 : i32
    %0 = arith.cmpi eq, %arg1, %c0_i32 : i32
    %c0_i32_0 = arith.constant 0 : i32
    %1 = arith.cmpi eq, %arg2, %c0_i32_0 : i32
    %2 = arith.andi %0, %1 : i1
    %3 = arith.extui %2 : i1 to i32
    %c0_i32_1 = arith.constant 0 : i32
    %4 = arith.cmpi ne, %3, %c0_i32_1 : i32
    scf.if %4 {
      %c0_27 = arith.constant 0 : index
      %c0_28 = arith.constant 0 : index
      %c0_29 = arith.constant 0 : index
      %81 = vector.load %arg3[%c0_27, %c0_28, %c0_29] : memref<1x8x64xf32, #tpu.memory_space<vmem>>, vector<1x8x64xf32>
      %82 = vector.shape_cast %81 : vector<1x8x64xf32> to vector<8x64xf32>
      %c0_30 = arith.constant 0 : index
      %c0_31 = arith.constant 0 : index
      %83 = vector.load %arg4[%c0_30, %c0_31] : memref<1x64xf32, #tpu.memory_space<vmem>>, vector<1x64xf32>
      %c0_32 = arith.constant 0 : index
      %c0_33 = arith.constant 0 : index
      %84 = vector.load %arg5[%c0_32, %c0_33] : memref<1x64xf32, #tpu.memory_space<vmem>>, vector<1x64xf32>
      %cst_34 = arith.constant dense<0.000000e+00> : vector<8xf32>
      %85 = vector.multi_reduction <add>, %82, %cst_34 [1] : vector<8x64xf32> to vector<8xf32>
      %86 = vector.shape_cast %85 : vector<8xf32> to vector<8x1xf32>
      %cst_35 = arith.constant 6.400000e+01 : f32
      %87 = vector.broadcast %cst_35 : f32 to vector<8x1xf32>
      %88 = arith.divf %86, %87 : vector<8x1xf32>
      %89 = vector.broadcast %88 : vector<8x1xf32> to vector<8x64xf32>
      %90 = arith.subf %82, %89 : vector<8x64xf32>
      %91 = arith.mulf %90, %90 : vector<8x64xf32>
      %cst_36 = arith.constant dense<0.000000e+00> : vector<8xf32>
      %92 = vector.multi_reduction <add>, %91, %cst_36 [1] : vector<8x64xf32> to vector<8xf32>
      %93 = vector.shape_cast %92 : vector<8xf32> to vector<8x1xf32>
      %cst_37 = arith.constant 6.400000e+01 : f32
      %94 = vector.broadcast %cst_37 : f32 to vector<8x1xf32>
      %95 = arith.divf %93, %94 : vector<8x1xf32>
      %96 = vector.broadcast %88 : vector<8x1xf32> to vector<8x64xf32>
      %97 = arith.subf %82, %96 : vector<8x64xf32>
      %cst_38 = arith.constant 9.99999974E-6 : f32
      %98 = vector.broadcast %cst_38 : f32 to vector<8x1xf32>
      %99 = arith.addf %95, %98 : vector<8x1xf32>
      %100 = math.rsqrt %99 : vector<8x1xf32>
      %101 = vector.broadcast %100 : vector<8x1xf32> to vector<8x64xf32>
      %102 = arith.mulf %97, %101 : vector<8x64xf32>
      %103 = vector.broadcast %83 : vector<1x64xf32> to vector<8x64xf32>
      %104 = arith.mulf %102, %103 : vector<8x64xf32>
      %105 = vector.broadcast %84 : vector<1x64xf32> to vector<8x64xf32>
      %106 = arith.addf %104, %105 : vector<8x64xf32>
      %c0_39 = arith.constant 0 : index
      %c0_40 = arith.constant 0 : index
      %107 = vector.load %arg12[%c0_39, %c0_40] : memref<8x64xf32, #tpu.memory_space<vmem>>, vector<8x64xf32>
      tpu.vector_store %arg12[%c0_39, %c0_40], %106 {strides = array<i32>} : memref<8x64xf32, #tpu.memory_space<vmem>>, vector<8x64xf32>,
      %c0_41 = arith.constant 0 : index
      %c0_42 = arith.constant 0 : index
      %108 = vector.load %arg8[%c0_41, %c0_42] : memref<64x64xf32, #tpu.memory_space<vmem>>, vector<64x64xf32>
      %cst_43 = arith.constant dense<0.000000e+00> : vector<8x64xf32>
      %109 = tpu.matmul %106, %108, %cst_43 {dimension_numbers = #tpu.dot_dimension_numbers<[1], [0], [0], [1], [0, 0, 1, 1], [], []>} : vector<8x64xf32>, vector<64x64xf32>, vector<8x64xf32> -> vector<8x64xf32>
      %c0_44 = arith.constant 0 : index
      %c0_45 = arith.constant 0 : index
      %110 = vector.load %arg9[%c0_44, %c0_45] : memref<64x64xf32, #tpu.memory_space<vmem>>, vector<64x64xf32>
      %cst_46 = arith.constant dense<0.000000e+00> : vector<8x64xf32>
      %111 = tpu.matmul %106, %110, %cst_46 {dimension_numbers = #tpu.dot_dimension_numbers<[1], [0], [0], [1], [0, 0, 1, 1], [], []>} : vector<8x64xf32>, vector<64x64xf32>, vector<8x64xf32> -> vector<8x64xf32>
      %c0_47 = arith.constant 0 : index
      %c0_48 = arith.constant 0 : index
      %112 = vector.load %arg10[%c0_47, %c0_48] : memref<1x64xf32, #tpu.memory_space<vmem>>, vector<1x64xf32>
      %113 = vector.broadcast %112 : vector<1x64xf32> to vector<8x64xf32>
      %114 = arith.addf %111, %113 : vector<8x64xf32>
      %c0_49 = arith.constant 0 : index
      %c0_50 = arith.constant 0 : index
      %c0_51 = arith.constant 0 : index
      %115 = vector.load %arg13[%c0_49, %c0_50, %c0_51] : memref<1x8x64xf32, #tpu.memory_space<vmem>>, vector<1x8x64xf32>
      %116 = vector.shape_cast %115 : vector<1x8x64xf32> to vector<8x64xf32>
      %117 = vector.shape_cast %109 : vector<8x64xf32> to vector<1x8x64xf32>
      tpu.vector_store %arg13[%c0_49, %c0_50, %c0_51], %117 {strides = array<i32>} : memref<1x8x64xf32, #tpu.memory_space<vmem>>, vector<1x8x64xf32>,
      %c0_52 = arith.constant 0 : index
      %c0_53 = arith.constant 0 : index
      %c0_54 = arith.constant 0 : index
      %118 = vector.load %arg14[%c0_52, %c0_53, %c0_54] : memref<1x8x64xf32, #tpu.memory_space<vmem>>, vector<1x8x64xf32>
      %119 = vector.shape_cast %118 : vector<1x8x64xf32> to vector<8x64xf32>
      %120 = vector.shape_cast %114 : vector<8x64xf32> to vector<1x8x64xf32>
      tpu.vector_store %arg14[%c0_52, %c0_53, %c0_54], %120 {strides = array<i32>} : memref<1x8x64xf32, #tpu.memory_space<vmem>>, vector<1x8x64xf32>,
    } else {
    }
    %c0_i32_2 = arith.constant 0 : i32
    %5 = arith.cmpi eq, %arg2, %c0_i32_2 : i32
    %6 = arith.extui %5 : i1 to i32
    %c0_i32_3 = arith.constant 0 : i32
    %7 = arith.cmpi ne, %6, %c0_i32_3 : i32
    scf.if %7 {
      %c8_i32 = arith.constant 8 : i32
      %81 = arith.muli %arg1, %c8_i32 : i32
      %82 = tpu.assume_multiple %81, 8 : i32
      %83 = arith.index_cast %82 : i32 to index
      %c0_27 = arith.constant 0 : index
      %84 = vector.load %arg12[%83, %c0_27] : memref<8x64xf32, #tpu.memory_space<vmem>>, vector<8x64xf32>
      %c0_28 = arith.constant 0 : index
      %c0_29 = arith.constant 0 : index
      %85 = vector.load %arg6[%c0_28, %c0_29] : memref<64x64xf32, #tpu.memory_space<vmem>>, vector<64x64xf32>
      %cst_30 = arith.constant dense<0.000000e+00> : vector<8x64xf32>
      %86 = tpu.matmul %84, %85, %cst_30 {dimension_numbers = #tpu.dot_dimension_numbers<[1], [0], [0], [1], [0, 0, 1, 1], [], []>} : vector<8x64xf32>, vector<64x64xf32>, vector<8x64xf32> -> vector<8x64xf32>
      %c0_31 = arith.constant 0 : index
      %c0_32 = arith.constant 0 : index
      %87 = vector.load %arg7[%c0_31, %c0_32] : memref<1x64xf32, #tpu.memory_space<vmem>>, vector<1x64xf32>
      %88 = vector.broadcast %87 : vector<1x64xf32> to vector<8x64xf32>
      %89 = arith.addf %86, %88 : vector<8x64xf32>
      %cst_33 = arith.constant 2.500000e-01 : f32
      %90 = vector.broadcast %cst_33 : f32 to vector<8x64xf32>
      %91 = arith.mulf %89, %90 : vector<8x64xf32>
      %c0_34 = arith.constant 0 : index
      %c0_35 = arith.constant 0 : index
      %c0_36 = arith.constant 0 : index
      %92 = vector.load %arg15[%c0_34, %c0_35, %c0_36] : memref<1x8x64xf32, #tpu.memory_space<vmem>>, vector<1x8x64xf32>
      %93 = vector.shape_cast %92 : vector<1x8x64xf32> to vector<8x64xf32>
      %94 = vector.shape_cast %91 : vector<8x64xf32> to vector<1x8x64xf32>
      tpu.vector_store %arg15[%c0_34, %c0_35, %c0_36], %94 {strides = array<i32>} : memref<1x8x64xf32, #tpu.memory_space<vmem>>, vector<1x8x64xf32>,
    } else {
    }
    %8 = arith.index_cast %arg2 : i32 to index
    %c0 = arith.constant 0 : index
    %c0_4 = arith.constant 0 : index
    %9 = vector.load %arg15[%8, %c0, %c0_4] : memref<1x8x64xf32, #tpu.memory_space<vmem>>, vector<1x8x64xf32>
    %10 = vector.shape_cast %9 : vector<1x8x64xf32> to vector<8x64xf32>
    %11 = arith.index_cast %arg2 : i32 to index
    %c0_5 = arith.constant 0 : index
    %c0_6 = arith.constant 0 : index
    %12 = vector.load %arg13[%11, %c0_5, %c0_6] : memref<1x8x64xf32, #tpu.memory_space<vmem>>, vector<1x8x64xf32>
    %13 = vector.shape_cast %12 : vector<1x8x64xf32> to vector<8x64xf32>
    %14 = arith.index_cast %arg2 : i32 to index
    %c0_7 = arith.constant 0 : index
    %c0_8 = arith.constant 0 : index
    %15 = vector.load %arg14[%14, %c0_7, %c0_8] : memref<1x8x64xf32, #tpu.memory_space<vmem>>, vector<1x8x64xf32>
    %16 = vector.shape_cast %15 : vector<1x8x64xf32> to vector<8x64xf32>
    %17 = vector.extract_strided_slice %10 {offsets = [0, 0], sizes = [8, 16], strides = [1, 1]} : vector<8x64xf32> to vector<8x16xf32>
    %18 = vector.extract_strided_slice %13 {offsets = [0, 0], sizes = [8, 16], strides = [1, 1]} : vector<8x64xf32> to vector<8x16xf32>
    %cst = arith.constant dense<0.000000e+00> : vector<8x8xf32>
    %19 = tpu.matmul %17, %18, %cst {dimension_numbers = #tpu.dot_dimension_numbers<[1], [1], [0], [0], [0, 0, 1, 0], [], []>} : vector<8x16xf32>, vector<8x16xf32>, vector<8x8xf32> -> vector<8x8xf32>
    %cst_9 = arith.constant dense<0xFF800000> : vector<8xf32>
    %20 = vector.multi_reduction <maximumf>, %19, %cst_9 [1] : vector<8x8xf32> to vector<8xf32>
    %21 = vector.shape_cast %20 : vector<8xf32> to vector<8x1xf32>
    %22 = vector.broadcast %21 : vector<8x1xf32> to vector<8x8xf32>
    %23 = arith.subf %19, %22 : vector<8x8xf32>
    %24 = math.exp %23 : vector<8x8xf32>
    %cst_10 = arith.constant dense<0.000000e+00> : vector<8xf32>
    %25 = vector.multi_reduction <add>, %24, %cst_10 [1] : vector<8x8xf32> to vector<8xf32>
    %26 = vector.shape_cast %25 : vector<8xf32> to vector<8x1xf32>
    %27 = tpu.reciprocal %26 {approx = true} : vector<8x1xf32> -> vector<8x1xf32>
    %28 = vector.broadcast %27 : vector<8x1xf32> to vector<8x8xf32>
    %29 = arith.mulf %24, %28 : vector<8x8xf32>
    %30 = vector.extract_strided_slice %16 {offsets = [0, 0], sizes = [8, 16], strides = [1, 1]} : vector<8x64xf32> to vector<8x16xf32>
    %cst_11 = arith.constant dense<0.000000e+00> : vector<8x16xf32>
    %31 = tpu.matmul %29, %30, %cst_11 {dimension_numbers = #tpu.dot_dimension_numbers<[1], [0], [0], [1], [0, 0, 1, 1], [], []>} : vector<8x8xf32>, vector<8x16xf32>, vector<8x16xf32> -> vector<8x16xf32>
    %32 = vector.extract_strided_slice %10 {offsets = [0, 16], sizes = [8, 16], strides = [1, 1]} : vector<8x64xf32> to vector<8x16xf32>
    %33 = vector.extract_strided_slice %13 {offsets = [0, 16], sizes = [8, 16], strides = [1, 1]} : vector<8x64xf32> to vector<8x16xf32>
    %cst_12 = arith.constant dense<0.000000e+00> : vector<8x8xf32>
    %34 = tpu.matmul %32, %33, %cst_12 {dimension_numbers = #tpu.dot_dimension_numbers<[1], [1], [0], [0], [0, 0, 1, 0], [], []>} : vector<8x16xf32>, vector<8x16xf32>, vector<8x8xf32> -> vector<8x8xf32>
    %cst_13 = arith.constant dense<0xFF800000> : vector<8xf32>
    %35 = vector.multi_reduction <maximumf>, %34, %cst_13 [1] : vector<8x8xf32> to vector<8xf32>
    %36 = vector.shape_cast %35 : vector<8xf32> to vector<8x1xf32>
    %37 = vector.broadcast %36 : vector<8x1xf32> to vector<8x8xf32>
    %38 = arith.subf %34, %37 : vector<8x8xf32>
    %39 = math.exp %38 : vector<8x8xf32>
    %cst_14 = arith.constant dense<0.000000e+00> : vector<8xf32>
    %40 = vector.multi_reduction <add>, %39, %cst_14 [1] : vector<8x8xf32> to vector<8xf32>
    %41 = vector.shape_cast %40 : vector<8xf32> to vector<8x1xf32>
    %42 = tpu.reciprocal %41 {approx = true} : vector<8x1xf32> -> vector<8x1xf32>
    %43 = vector.broadcast %42 : vector<8x1xf32> to vector<8x8xf32>
    %44 = arith.mulf %39, %43 : vector<8x8xf32>
    %45 = vector.extract_strided_slice %16 {offsets = [0, 16], sizes = [8, 16], strides = [1, 1]} : vector<8x64xf32> to vector<8x16xf32>
    %cst_15 = arith.constant dense<0.000000e+00> : vector<8x16xf32>
    %46 = tpu.matmul %44, %45, %cst_15 {dimension_numbers = #tpu.dot_dimension_numbers<[1], [0], [0], [1], [0, 0, 1, 1], [], []>} : vector<8x8xf32>, vector<8x16xf32>, vector<8x16xf32> -> vector<8x16xf32>
    %47 = vector.extract_strided_slice %10 {offsets = [0, 32], sizes = [8, 16], strides = [1, 1]} : vector<8x64xf32> to vector<8x16xf32>
    %48 = vector.extract_strided_slice %13 {offsets = [0, 32], sizes = [8, 16], strides = [1, 1]} : vector<8x64xf32> to vector<8x16xf32>
    %cst_16 = arith.constant dense<0.000000e+00> : vector<8x8xf32>
    %49 = tpu.matmul %47, %48, %cst_16 {dimension_numbers = #tpu.dot_dimension_numbers<[1], [1], [0], [0], [0, 0, 1, 0], [], []>} : vector<8x16xf32>, vector<8x16xf32>, vector<8x8xf32> -> vector<8x8xf32>
    %cst_17 = arith.constant dense<0xFF800000> : vector<8xf32>
    %50 = vector.multi_reduction <maximumf>, %49, %cst_17 [1] : vector<8x8xf32> to vector<8xf32>
    %51 = vector.shape_cast %50 : vector<8xf32> to vector<8x1xf32>
    %52 = vector.broadcast %51 : vector<8x1xf32> to vector<8x8xf32>
    %53 = arith.subf %49, %52 : vector<8x8xf32>
    %54 = math.exp %53 : vector<8x8xf32>
    %cst_18 = arith.constant dense<0.000000e+00> : vector<8xf32>
    %55 = vector.multi_reduction <add>, %54, %cst_18 [1] : vector<8x8xf32> to vector<8xf32>
    %56 = vector.shape_cast %55 : vector<8xf32> to vector<8x1xf32>
    %57 = tpu.reciprocal %56 {approx = true} : vector<8x1xf32> -> vector<8x1xf32>
    %58 = vector.broadcast %57 : vector<8x1xf32> to vector<8x8xf32>
    %59 = arith.mulf %54, %58 : vector<8x8xf32>
    %60 = vector.extract_strided_slice %16 {offsets = [0, 32], sizes = [8, 16], strides = [1, 1]} : vector<8x64xf32> to vector<8x16xf32>
    %cst_19 = arith.constant dense<0.000000e+00> : vector<8x16xf32>
    %61 = tpu.matmul %59, %60, %cst_19 {dimension_numbers = #tpu.dot_dimension_numbers<[1], [0], [0], [1], [0, 0, 1, 1], [], []>} : vector<8x8xf32>, vector<8x16xf32>, vector<8x16xf32> -> vector<8x16xf32>
    %62 = vector.extract_strided_slice %10 {offsets = [0, 48], sizes = [8, 16], strides = [1, 1]} : vector<8x64xf32> to vector<8x16xf32>
    %63 = vector.extract_strided_slice %13 {offsets = [0, 48], sizes = [8, 16], strides = [1, 1]} : vector<8x64xf32> to vector<8x16xf32>
    %cst_20 = arith.constant dense<0.000000e+00> : vector<8x8xf32>
    %64 = tpu.matmul %62, %63, %cst_20 {dimension_numbers = #tpu.dot_dimension_numbers<[1], [1], [0], [0], [0, 0, 1, 0], [], []>} : vector<8x16xf32>, vector<8x16xf32>, vector<8x8xf32> -> vector<8x8xf32>
    %cst_21 = arith.constant dense<0xFF800000> : vector<8xf32>
    %65 = vector.multi_reduction <maximumf>, %64, %cst_21 [1] : vector<8x8xf32> to vector<8xf32>
    %66 = vector.shape_cast %65 : vector<8xf32> to vector<8x1xf32>
    %67 = vector.broadcast %66 : vector<8x1xf32> to vector<8x8xf32>
    %68 = arith.subf %64, %67 : vector<8x8xf32>
    %69 = math.exp %68 : vector<8x8xf32>
    %cst_22 = arith.constant dense<0.000000e+00> : vector<8xf32>
    %70 = vector.multi_reduction <add>, %69, %cst_22 [1] : vector<8x8xf32> to vector<8xf32>
    %71 = vector.shape_cast %70 : vector<8xf32> to vector<8x1xf32>
    %72 = tpu.reciprocal %71 {approx = true} : vector<8x1xf32> -> vector<8x1xf32>
    %73 = vector.broadcast %72 : vector<8x1xf32> to vector<8x8xf32>
    %74 = arith.mulf %69, %73 : vector<8x8xf32>
    %75 = vector.extract_strided_slice %16 {offsets = [0, 48], sizes = [8, 16], strides = [1, 1]} : vector<8x64xf32> to vector<8x16xf32>
    %cst_23 = arith.constant dense<0.000000e+00> : vector<8x16xf32>
    %76 = tpu.matmul %74, %75, %cst_23 {dimension_numbers = #tpu.dot_dimension_numbers<[1], [0], [0], [1], [0, 0, 1, 1], [], []>} : vector<8x8xf32>, vector<8x16xf32>, vector<8x16xf32> -> vector<8x16xf32>
    %77 = tpu.concatenate %31, %46, %61, %76 in 1 : vector<8x16xf32>, vector<8x16xf32>, vector<8x16xf32>, vector<8x16xf32> -> vector<8x64xf32>
    %c0_24 = arith.constant 0 : index
    %c0_25 = arith.constant 0 : index
    %c0_26 = arith.constant 0 : index
    %78 = vector.load %arg11[%c0_24, %c0_25, %c0_26] : memref<1x8x64xf32, #tpu.memory_space<vmem>>, vector<1x8x64xf32>
    %79 = vector.shape_cast %78 : vector<1x8x64xf32> to vector<8x64xf32>
    %80 = vector.shape_cast %77 : vector<8x64xf32> to vector<1x8x64xf32>
    tpu.vector_store %arg11[%c0_24, %c0_25, %c0_26], %80 {strides = array<i32>} : memref<1x8x64xf32, #tpu.memory_space<vmem>>, vector<1x8x64xf32>,
    return
  }
  func.func @transform_0(%arg0: i32, %arg1: i32, %arg2: i32) -> (i32, i32, i32) {
    %c0_i32 = arith.constant 0 : i32
    %c0_i32_0 = arith.constant 0 : i32
    %c0_i32_1 = arith.constant 0 : i32
    return %arg0, %c0_i32, %c0_i32_0 : i32, i32, i32
  }
  func.func @transform_1(%arg0: i32, %arg1: i32, %arg2: i32) -> (i32, i32) {
    %c0_i32 = arith.constant 0 : i32
    %c0_i32_0 = arith.constant 0 : i32
    %c0_i32_1 = arith.constant 0 : i32
    return %c0_i32, %c0_i32_0 : i32, i32
  }
  func.func @transform_2(%arg0: i32, %arg1: i32, %arg2: i32) -> (i32, i32) {
    %c0_i32 = arith.constant 0 : i32
    %c0_i32_0 = arith.constant 0 : i32
    %c0_i32_1 = arith.constant 0 : i32
    return %c0_i32, %c0_i32_0 : i32, i32
  }
  func.func @transform_3(%arg0: i32, %arg1: i32, %arg2: i32) -> (i32, i32) {
    %c0_i32 = arith.constant 0 : i32
    %c0_i32_0 = arith.constant 0 : i32
    %c0_i32_1 = arith.constant 0 : i32
    return %c0_i32, %c0_i32_0 : i32, i32
  }
  func.func @transform_4(%arg0: i32, %arg1: i32, %arg2: i32) -> (i32, i32) {
    %c0_i32 = arith.constant 0 : i32
    %c0_i32_0 = arith.constant 0 : i32
    %c0_i32_1 = arith.constant 0 : i32
    return %c0_i32, %c0_i32_0 : i32, i32
  }
  func.func @transform_5(%arg0: i32, %arg1: i32, %arg2: i32) -> (i32, i32) {
    %c0_i32 = arith.constant 0 : i32
    %c0_i32_0 = arith.constant 0 : i32
    %c0_i32_1 = arith.constant 0 : i32
    return %c0_i32, %c0_i32_0 : i32, i32
  }
  func.func @transform_6(%arg0: i32, %arg1: i32, %arg2: i32) -> (i32, i32) {
    %c0_i32 = arith.constant 0 : i32
    %c0_i32_0 = arith.constant 0 : i32
    %c0_i32_1 = arith.constant 0 : i32
    return %c0_i32, %c0_i32_0 : i32, i32
  }
  func.func @transform_7(%arg0: i32, %arg1: i32, %arg2: i32) -> (i32, i32) {
    %c0_i32 = arith.constant 0 : i32
    %c0_i32_0 = arith.constant 0 : i32
    %c0_i32_1 = arith.constant 0 : i32
    return %c0_i32, %c0_i32_0 : i32, i32
  }
  func.func @transform_8(%arg0: i32, %arg1: i32, %arg2: i32) -> (i32, i32, i32) {
    %c0_i32 = arith.constant 0 : i32
    return %arg0, %arg1, %arg2 : i32, i32, i32
  }
}

</mosaic_0001>

<bundles_post_ra>
// kernel: tpu_custom_call.1
= control target key start
LH: loop header
LB: loop body
LE: loop exit
PB: predicated region body
PF: predicated region fallthrough
CT: control target
= control target key end

     0   :  { %s1687_s0 = inlined_call_operand.hbm [shape: f32[2,8,64], index: 0, kind: input, shape index: {}]   ;;  %s1688_s1 = inlined_call_operand.hbm [shape: f32[1,64], index: 1, kind: input, shape index: {}]   ;;  %s1689_s2 = inlined_call_operand.vmem [shape: f32[1,64], index: 2, kind: input, shape index: {}]   ;;  %s1690_s3 = inlined_call_operand.hbm [shape: f32[64,64], index: 3, kind: input, shape index: {}]   ;;  %s1691_s4 = inlined_call_operand.vmem [shape: f32[1,64], index: 4, kind: input, shape index: {}]   ;;  %s1692_s5 = inlined_call_operand.hbm [shape: f32[64,64], index: 5, kind: input, shape index: {}]   ;;  %s1693_s6 = inlined_call_operand.hbm [shape: f32[64,64], index: 6, kind: input, shape index: {}]   ;;  %s1694_s7 = inlined_call_operand.vmem [shape: f32[1,64], index: 7, kind: input, shape index: {}]   ;;  %s1695_s8 = inlined_call_operand.hbm [shape: f32[2,8,64], index: 8, kind: output, shape index: {}]  }
   0x1   :  { %1704 = sst [smem:[#allocation24_spill]] %s1688_s1 }
   0x2   :  { %1705 = sst [smem:[#allocation25_spill]] %s1690_s3 }
   0x3   :  { %1706 = sst [smem:[#allocation26_spill]] %s1692_s5 }
   0x4   :  { %13 = vsyncpa [#allocation7], 0 }
   0x5   :  { %14 = vsyncpa [#allocation10], 0 }
   0x6   :  { %15 = vsyncpa [#allocation13], 0 }
   0x7   :  { %16 = vsyncpa [#allocation8], 0 }
   0x8   :  { %18 = vsyncpa [#allocation8 + $0x1], 0  ;;  %s1441_s27 = smov 0   ;;  %s1443_s28 = smov 0  }
   0x9   :  { %s1445_s29 = smov 0   ;;  %s1447_s30 = smov 0  }
   0xa   :  { %s1449_s9 = smov 0   ;;  %s1451_s10 = smov 0  }
   0xb LB: > { %1707 = sst [smem:[#allocation20_spill]] %s1368_s29  ;;  %s972_s14 = sadd.s32 4294967295, %s1380_s10   ;;  %s1380_s10 = sphi %s1451_s10, %s24_s10   ;;  %s1376_s9 = sphi %s1449_s9, %s1728_s9   ;;  %s1372_s30 = sphi %s1447_s30, %s1727_s30   ;;  %s1368_s29 = sphi %s1445_s29, %s1726_s29   ;;  %s1364_s28 = sphi %s1443_s28, %s1730_s28   ;;  %s1360_s27 = sphi %s1441_s27, %s1729_s27  }
   0xc   : > { %1708 = sst [smem:[#allocation21_spill]] %s1376_s9  ;;  %p974_p0 = scmp.ge.s32.totalorder %s1380_s10, 1 }
   0xd   : > { %s1709_s1 = sld [smem:[#allocation24_spill]]  ;;  %p1476_p1 = scmp.eq.s32.totalorder %s972_s14, 0 }
   0xe   : > { %p251_p2 = scmp.lt.s32.totalorder %s1380_s10, 3  ;;  %s1382_s17 = smov [#allocation9]  }
   0xf   : > { %s279_s18 = sshll.u32 %s1382_s17, 4  ;;  %s1712_s5 = sld [smem:[#allocation26_spill]]  ;;  %s280_s18 = int_to_ptr.vmem [resolvable:$true] %s279_s18 }
  0x10   : > { %p1481_p3 = pnand %p974_p0, %p251_p2  ;;  %s1383_s23 = smov [#allocation12]  }
  0x11   : > { %s310_s24 = sshll.u32 %s1383_s23, 4  ;;  %s1696_s25 = smov 128   ;;  %s311_s24 = int_to_ptr.vmem [resolvable:$true] %s310_s24 }
  0x12   : > { %p1025_p4 = pneg %p1481_p3  ;;  %s1698_s26 = smov 8  }
  0x13   : > { %s277_s13 = sshll.u32 %s1709_s1, 4  ;;  %s973_s11 = sadd.s32 4294967294, %s1380_s10   ;;  %s278_s13 = int_to_ptr.hbm [resolvable:$true] %s277_s13 }
  0x14   : > { %p1495_p5 = pnand %p1025_p4, %p1476_p1  ;;  %s43_s12 = sadd.s32 1, %s1376_s9 }
  0x15   : > { %s308_s21 = sshll.u32 %s1712_s5, 4  ;;  %s50_s17 = sadd.s32 1, %s1368_s29  ;;  %s309_s21 = int_to_ptr.hbm [resolvable:$true] %s308_s21 }
  0x16   : > { %1031 = dma.hbm_to_vmem [thread:$0]  (!%p1495_p5), %s278_s13, 16, %s280_s18, [#allocation10]  }
  0x17   : > { %1037 = dma.hbm_to_vmem [thread:$0]  (!%p1495_p5), %s309_s21, 1024, %s311_s24, [#allocation13], %s1696_s25, %s1696_s25, %s1698_s26  }
  0x18   : > { %p45_p6 = scmp.ge.s32.totalorder %s43_s12, 2  ;;  %p63_p7 = scmp.ne.s32.totalorder %s1364_s28, %s1360_s27 }
  0x19   : > { %p237_p8 = scmp.ne.s32.totalorder %s1368_s29, %s1364_s28  ;;  %p238_p9 = scmp.eq.s32.totalorder %s972_s14, 1 }
  0x1a   : > { %s1732_s12 = smov (%p45_p6, %s43_s12), 0  ;;  %p1517_p10 = por %p1476_p1, %p63_p7 }
  0x1b   : > { %1714 = sst [smem:[#allocation22_spill]] %s1732_s12  ;;  %p1521_p11 = por %p238_p9, %p237_p8 }
  0x1c   : > { %s47_s19 = ssub.s32 %s1376_s9, %s1732_s12  ;;  %p244_p12 = scmp.eq.s32.totalorder %s973_s11, 1 }
  0x1d   : > { %p48_p13 = scmp.eq.s32.totalorder %s47_s19, 0  ;;  %s1701_s20 = sshll.u32 %s1372_s30, 3 }
  0x1e   : > { %p1528_p0 = por %p244_p12, %p63_p7  ;;  %s263_s24 = scalar_lea.hbm %s1687_s0, %s1701_s20 }
  0x1f   : > { %s1538_s25 = scalar_select %p48_p13, %s1368_s29, %s50_s17  }
  0x20   : > { %s1717_s14 = scalar_select %p1528_p0, 1, 0 }
  0x21   : > { %1718 = sst [smem:[#allocation23_spill]] %s1538_s25  ;;  %s265_s26 = sshll.u32 %s263_s24, 4  ;;  %s266_s26 = int_to_ptr.hbm [resolvable:$true] %s265_s26 }
  0x22   : > { %s1386_s1 = smov [#allocation6]   ;;  %p1545_p2 = pnand %p1025_p4, %p1517_p10 }
  0x23   : > { %s267_s5 = sshll.u32 %s1386_s1, 4  ;;  %s1720_s3 = sld [smem:[#allocation25_spill]]  ;;  %s268_s5 = int_to_ptr.vmem [resolvable:$true] %s267_s5 }
  0x24   : > { %s1200_s17 = sshra.s32 %s266_s26, 4  ;;  %p1204_p7 = pneg %p1545_p2  ;;  %s1201_s17 = int_to_ptr.hbm [resolvable:$true] %s1200_s17 }
  0x25   : > { %s1202_s23 = scalar_lea.hbm %s1201_s17, 8  ;;  %s1207_s20 = scalar_lea.hbm %s1687_s0, 16 }
  0x26   : > { %p1203_p6 = scmp.ne.s32.totalorder %s1201_s17, %s1202_s23  ;;  %p1208_p4 = scmp.lt.s32.totalorder %s1201_s17, %s1687_s0 }
  0x27   : > { %p1209_p12 = scmp.lt.s32.totalorder %s1207_s20, %s1202_s23 }
  0x28   : > { %p1205_p8 = pnand %p1204_p7, %p1203_p6 }
  0x29   : > { %s291_s21 = sshll.u32 %s1720_s3, 4  ;;  %p1210_p13 = por %p1209_p12, %p1208_p4  ;;  %s292_s21 = int_to_ptr.hbm [resolvable:$true] %s291_s21 }
  0x2a   : > { %p1206_p9 = pneg %p1205_p8 }
  0x2c   : > { %p1211_p0 = pnand %p1210_p13, %p1206_p9 }
  0x2e   : > { %1214 = shalt.err (!%p1211_p0)
}
  0x2f   : > { %1028 = dma.hbm_to_vmem [thread:$0]  (!%p1545_p2), %s266_s26, 128, %s268_s5, [#allocation7]  }
  0x30   : > { %s1387_s12 = smov [#allocation11]   ;;  %s322_s1 = sshll.u32 %s1693_s6, 4  ;;  %s323_s1 = int_to_ptr.hbm [resolvable:$true] %s322_s1 }
  0x31   : > { %s293_s19 = sshll.u32 %s1387_s12, 4  ;;  %s1721_s24 = smov 8   ;;  %s294_s19 = int_to_ptr.vmem [resolvable:$true] %s293_s19 }
  0x32   : > { %s1722_s9 = smov 128   ;;  %s1388_s25 = smov [#allocation14]  }
  0x33   : > { %1034 = dma.hbm_to_vmem [thread:$0]  (!%p1495_p5), %s292_s21, 1024, %s294_s19, [#allocation10], %s1722_s9, %s1722_s9, %s1721_s24  }
  0x34   : > { %s324_s20 = sshll.u32 %s1388_s25, 4  ;;  %343 = sbr.rel (%p1481_p3) target bundleno = 1510 (0x5e6), region = 52  ;;  %s325_s20 = int_to_ptr.vmem [resolvable:$true] %s324_s20 }
  0x35   : > { %1040 = dma.hbm_to_vmem [thread:$0]  (!%p1495_p5), %s323_s1, 1024, %s325_s20, [#allocation13], %s1722_s9, %s1722_s9, %s1721_s24  }
  0x39   : > { %1343 = dma.done.wait (%p1517_p10), [#allocation7], 128  }
  0x3a   : > { %1345 = vsyncadd (%p1517_p10), [#allocation7], 4294967168 }
  0x3b   : > { %1347 = dma.done.wait (%p1476_p1), [#allocation10], 1040  }
  0x3c   : > { %1349 = vsyncadd (%p1476_p1), [#allocation10], 4294966256 }
  0x3d   : > { %1351 = dma.done.wait (%p1476_p1), [#allocation13], 2048  }
  0x3e   : > { %1353 = vsyncadd (%p1476_p1), [#allocation13], 4294965248  ;;  %vm402_vm0 = vcmask 523264   ;;  %v399_v0 = vld [vmem:[#allocation6] sm:$0xff]  ;;  %v1389_v2 = vmov 64.0   ;;  %v446_v18 = vld [vmem:[#allocation12 + $0x28] sm:$0xff] }
  0x3f   : > { %v403_v1 = vsel %vm402_vm0, %v399_v0, 0.0  ;;  %1120 = vrcp.f32 %v1389_v2  ;;  %v448_v14 = vld [vmem:[#allocation12 + $0x38] sm:$0xff]  ;;  %v447_v16 = vld [vmem:[#allocation12 + $0x30] sm:$0xff]  ;;  %v477_v19 = vld [vmem:[#allocation14 + $0x28] sm:$0xff]  ;;  %vm557_vm5 = vcmask 130048   ;;  %s1390_s16 = smov 96  }
  0x40   : > { %404 = vadd.xlane.f32.xlu0 %v403_v1  ;;  %v479_v15 = vld [vmem:[#allocation14 + $0x38] sm:$0xff]  ;;  %460 = vmatpush.msra.mxu0 %v448_v14  ;;  %v478_v17 = vld [vmem:[#allocation14 + $0x30] sm:$0xff]  ;;  %v445_v20 = vld [vmem:[#allocation12 + $0x20] sm:$0xff]  ;;  %s1391_s22 = smov 112   ;;  %s1392_s11 = smov 80   ;;  %vm584_vm6 = vcmask 64512  }
  0x41   : > { %492 = vmatpush.msra.mxu1 %v479_v15  ;;  %v476_v21 = vld [vmem:[#allocation14 + $0x20] sm:$0xff]  ;;  %v444_v22 = vld [vmem:[#allocation12 + $0x18] sm:$0xff]  ;;  %v443_v25 = vld [vmem:[#allocation12 + $0x10] sm:$0xff]  ;;  %s1393_s21 = smov 32   ;;  %s1394_s17 = smov 16   ;;  %vm828_vm7 = vcmask 261120  }
  0x42   : > { %461 = vmatpush.msra.mxu0 %v447_v16  ;;  %v475_v23 = vld [vmem:[#allocation14 + $0x18] sm:$0xff]  ;;  %v474_v26 = vld [vmem:[#allocation14 + $0x10] sm:$0xff]  ;;  %v442_v28 = vld [vmem:[#allocation12 + $0x8] sm:$0xff]  ;;  %s1395_s23 = smov 48   ;;  %s390_s12 = sand.u32 1, %s1364_s28   ;;  %vm830_vm8 = vcmask 392192  }
  0x43   : > { %493 = vmatpush.msra.mxu1 %v478_v17  ;;  %v519_v24 = vld [vmem:[#allocation11 + $0x38] sm:$0xff]  ;;  %v518_v27 = vld [vmem:[#allocation11 + $0x30] sm:$0xff]  ;;  %v473_v29 = vld [vmem:[#allocation14 + $0x8] sm:$0xff]  ;;  %s985_s19 = sshll.u32 %s390_s12, 3  ;;  %s1723_s1 = sshll.u32 %s1372_s30, 3 }
  0x44   : > { %462 = vmatpush.msra.mxu0 %v446_v18  ;;  %536 = vmatpush.msra.mxu2 %v519_v24  ;;  %v517_v30 = vld [vmem:[#allocation11 + $0x28] sm:$0xff]  ;;  %v441_v31 = vld [vmem:[#allocation12] sm:$0xff]  ;;  %v515_v34 = vld [vmem:[#allocation11 + $0x18] sm:$0xff]  ;;  %s847_s25 = scalar_lea.hbm %s1695_s8, %s1723_s1  ;;  %s392_s20 = scalar_lea.vmem [#allocation15], %s985_s19 }
  0x45   : > { %v1121_v3 = vpop.eup %1120  ;;  %494 = vmatpush.msra.mxu1 %v477_v19  ;;  %v472_v32 = vld [vmem:[#allocation14] sm:$0xff]  ;;  %v514_v35 = vld [vmem:[#allocation11 + $0x10] sm:$0xff]  ;;  %v513_v37 = vld [vmem:[#allocation11 + $0x8] sm:$0xff]  ;;  %s849_s3 = sshll.u32 %s392_s20, 4  ;;  %s851_s5 = sshll.u32 %s847_s25, 4  ;;  %s850_s3 = int_to_ptr.vmem [resolvable:$true] %s849_s3  ;;  %s852_s5 = int_to_ptr.hbm [resolvable:$true] %s851_s5 }
  0x46   : > { %v407_v4 = vmul.f32 64.0, %v1121_v3  ;;  %vm411_vm1 = vweird.f32 %v1121_v3  ;;  %463 = vmatpush.msra.mxu0 %v445_v20  ;;  %537 = vmatpush.msra.mxu2 %v518_v27  ;;  %v516_v33 = vld [vmem:[#allocation11 + $0x20] sm:$0xff]  ;;  %v1116_v47 = vld [vmem:[#allocation9] ss:$0 sm:$0xff]  ;;  %v1117_v50 = vld [vmem:[%s1689_s2] ss:$0 sm:$0xff] }
  0x47   : > { %495 = vmatpush.msra.mxu1 %v476_v21  ;;  %v512_v39 = vld [vmem:[#allocation11] sm:$0xff]  ;;  %v1118_v54 = vld [vmem:[%s1694_s7] ss:$0 sm:$0xff]  ;;  %s835_s30 = scalar_lea.sflag [#allocation8], %s390_s12  ;;  %s1304_s29 = sshra.s32 %s852_s5, 4  ;;  %s1305_s29 = int_to_ptr.hbm [resolvable:$true] %s1304_s29 }
  0x48   : > { %v408_v5 = vsub.f32 1.0, %v407_v4  ;;  %464 = vmatpush.msra.mxu0 %v444_v22  ;;  %538 = vmatpush.msra.mxu2 %v517_v30  ;;  %v1119_v60 = vld [vmem:[%s1691_s4] ss:$0 sm:$0xff]  ;;  %s1306_s15 = scalar_lea.hbm %s1305_s29, 8  ;;  %s1310_s26 = scalar_lea.hbm %s1695_s8, 16 }
  0x49   : > { %496 = vmatpush.msra.mxu1 %v475_v23  ;;  %p1307_p1 = scmp.ne.s32.totalorder %s1305_s29, %s1306_s15  ;;  %p1311_p10 = scmp.lt.s32.totalorder %s1305_s29, %s1695_s8 }
  0x4a   : > { %v409_v6 = vmul.f32 %v1121_v3, %v408_v5  ;;  %465 = vmatpush.msra.mxu0 %v443_v25  ;;  %539 = vmatpush.msra.mxu2 %v516_v33  ;;  %p1312_p0 = scmp.lt.s32.totalorder %s1310_s26, %s1306_s15 }
  0x4b   : > { %497 = vmatpush.msra.mxu1 %v474_v26  ;;  %p1308_p3 = pnand %p1307_p1, %p1521_p11 }
  0x4c   : > { %v410_v7 = vadd.f32 %v1121_v3, %v409_v6  ;;  %466 = vmatpush.msra.mxu0 %v442_v28  ;;  %540 = vmatpush.msra.mxu2 %v515_v34  ;;  %p1313_p2 = por %p1312_p0, %p1311_p10 }
  0x4d   : > { %498 = vmatpush.msra.mxu1 %v473_v29  ;;  %p1309_p5 = pneg %p1308_p3 }
  0x4e   : > { %v412_v8 = vsel %vm411_vm1, %v1121_v3, %v410_v7  ;;  %467 = vmatpush.msra.mxu0 %v441_v31  ;;  %541 = vmatpush.msra.mxu2 %v514_v35 }
  0x4f   : > { %499 = vmatpush.msra.mxu1 %v472_v32  ;;  %p1314_p6 = pnand %p1313_p2, %p1309_p5 }
  0x50   : > { %542 = vmatpush.msra.mxu2 %v513_v37 }
  0x52   : > { %543 = vmatpush.msra.mxu2 %v512_v39 }
  0xb3   : > { %v405_v9 = vpop.xlane.xlu0 %404 }
  0xb4   : > { %v413_v10 = vmul.f32 %v412_v8, %v405_v9 }
  0xb6   : > { %v1590_v11 = vsub.f32 %v399_v0, %v413_v10 }
  0xb8   : > { %v415_v12 = vmul.f32 %v1590_v11, %v1590_v11 }
  0xba   : > { %v416_v13 = vsel %vm402_vm0, %v415_v12, 0.0 }
  0xbb   : > { %417 = vadd.xlane.f32.xlu0 %v416_v13 }
 0x12e   : > { %v418_v36 = vpop.xlane.xlu0 %417 }
 0x12f   : > { %v419_v38 = vmul.f32 %v418_v36, %v412_v8 }
 0x131   : > { %v420_v40 = vadd.f32 1e-05, %v419_v38 }
 0x133   : > { %1122 = vrsqrt.f32 %v420_v40  ;;  %vm427_vm3 = vweird.f32 %v420_v40 }
 0x139   : > { %v1123_v41 = vpop.eup %1122 }
 0x13a   : > { %v422_v42 = vmul.f32 %v1123_v41, %v420_v40  ;;  %vm428_vm2 = vweird.f32 %v1123_v41 }
 0x13b   : > { %vm429_vm4 = vmor %vm427_vm3, %vm428_vm2 }
 0x13c   : > { %v423_v43 = vmul.f32 %v1123_v41, %v422_v42 }
 0x13e   : > { %v424_v44 = vmul.f32 0.5, %v423_v43 }
 0x140   : > { %v425_v45 = vsub.f32 1.5, %v424_v44 }
 0x142   : > { %v426_v46 = vmul.f32 %v1123_v41, %v425_v45 }
 0x144   : > { %v430_v48 = vsel %vm429_vm4, %v1123_v41, %v426_v46 }
 0x145   : > { %v431_v49 = vmul.f32 %v430_v48, %v1590_v11 }
 0x147   : > { %v435_v51 = vmul.f32 %v1116_v47, %v431_v49 }
 0x149   : > { %v439_v52 = vadd.f32 %v1117_v50, %v435_v51 }
 0x14b   : > { %440 = vst.msk [vmem:[#allocation2] sm:$0xff] %vm402_vm0, %v439_v52  ;;  %986 = vmatmul.msk.f32.vlgmr.msra.gmra.mxu0 %vm402_vm0, %v439_v52  ;;  %987 = vmatmul.msk.f32.vlgmr.msra.gmra.mxu1 %vm402_vm0, %v439_v52 }
 0x152   : > { %v511_v53 = vld [vmem:[#allocation2] sm:$0xff] }
 0x153   : > { %988 = vmatmul.msk.f32.vlgmr.msra.gmra.mxu2 %vm402_vm0, %v511_v53 }
 0x1c8   : > { %v469_v55 = vpop.f32.mrf.mxu0  ;;  %v501_v56 = vpop.f32.mrf.mxu1 }
 0x1c9   : > { %504 = vst.msk [vmem:[#allocation3] sm:$0xff] %vm402_vm0, %v469_v55  ;;  %v502_v57 = vadd.f32 %v1118_v54, %v501_v56 }
 0x1cb   : > { %505 = vst.msk [vmem:[#allocation4] sm:$0xff] %vm402_vm0, %v502_v57 }
 0x1d0   : > { %v554_v58 = vld [vmem:[#allocation3] sm:$0xff] }
 0x1d1   : > { %687 = vrot.lane.b32.xlu0 %v554_v58, %s1390_s16  ;;  %621 = vrot.lane.b32.xlu2 %v554_v58, %s1391_s22 }
 0x1d2   : > { %989 = vmatpush.xpose.msk.msra.mxu3 %vm557_vm5, %v554_v58  ;;  %v1611_v59 = vld [vmem:[#allocation4] sm:$0xff] }
 0x1d6   : > { %614 = vmatpush.msrb.mxu3 %v1611_v59  ;;  %v545_v61 = vpop.f32.mrf.mxu2 }
 0x1d7   : > { %v546_v62 = vadd.f32 %v1119_v60, %v545_v61 }
 0x1d9   : > { %v548_v63 = vmul.f32 0.25, %v546_v62 }
 0x1db   : > { %549 = vst.msk [vmem:[#allocation5] sm:$0xff] %vm402_vm0, %v548_v63 }
 0x1e2   : > { %v552_v0 = vld [vmem:[#allocation5] sm:$0xff] }
 0x1e3   : > { %619 = vrot.lane.b32.xlu2 %v552_v0, %s1391_s22  ;;  %990 = vmatmul.msk.f32.vlgmr.msra.gmra.mxu3 %vm557_vm5, %v552_v0 }
 0x1eb   : > { %685 = vrot.lane.b32.xlu2 %v552_v0, %s1390_s16 }
 0x1f3   : > { %750 = vrot.lane.b32.xlu2 %v552_v0, %s1392_s11 }
 0x22b   : > { %v622_v1 = vpop.permute.xlu2 %621 }
 0x22c   : > { %992 = vmatpush.xpose.msk.msra.mxu3 %vm557_vm5, %v622_v1 }
 0x23d   : > { %v620_v2 = vpop.permute.xlu2 %619 }
 0x243   : > { %v688_v3 = vpop.permute.xlu0 %687 }
 0x244   : > { %995 = vmatpush.xpose.msk.msrb.mxu1 %vm557_vm5, %v688_v3 }
 0x245   : > { %v686_v4 = vpop.permute.xlu2 %685 }
 0x247   : > { %996 = vmatmul.msk.f32.vlgmr.msrb.gmra.mxu1 %vm557_vm5, %v686_v4 }
 0x24d   : > { %v751_v23 = vpop.permute.xlu2 %750 }
 0x266   : > { %v581_v5 = vpop.f32.mrf.mxu3 }
 0x267   : > { %v585_v6 = vsel %vm584_vm6, %v581_v5, -inf }
 0x268   : > { %586 = vmax.xlane.f32.xlu1 %v585_v6 }
 0x2c4   : > { %v710_v7 = vpop.f32.mrf.mxu1 }
 0x2c5   : > { %v713_v8 = vsel %vm584_vm6, %v710_v7, -inf }
 0x2c6   : > { %714 = vmax.xlane.f32.xlu0 %v713_v8 }
 0x2db   : > { %v587_v9 = vpop.xlane.xlu1 %586 }
 0x2dc   : > { %v588_v10 = vsub.f32 %v581_v5, %v587_v9 }
 0x2de   : > { %v589_v11 = vmul.f32 1.442695, %v588_v10 }
 0x2e0   : > { %1124 = vpow2.f32 %v589_v11 }
 0x2e6   : > { %v1125_v12 = vpop.eup %1124 }
 0x2e7   : > { %v591_v13 = vsel %vm584_vm6, %v1125_v12, 0.0 }
 0x2e8   : > { %592 = vadd.xlane.f32.xlu1 %v591_v13 }
 0x301   : > { %752 = vrot.lane.b32.xlu1 %v554_v58, %s1392_s11 }
 0x339   : > { %v715_v14 = vpop.xlane.xlu0 %714 }
 0x33a   : > { %v716_v15 = vsub.f32 %v710_v7, %v715_v14 }
 0x33c   : > { %v717_v16 = vmul.f32 1.442695, %v716_v15 }
 0x33e   : > { %1126 = vpow2.f32 %v717_v16 }
 0x344   : > { %v1127_v17 = vpop.eup %1126 }
 0x345   : > { %v719_v18 = vsel %vm584_vm6, %v1127_v17, 0.0 }
 0x346   : > { %720 = vadd.xlane.f32.xlu0 %v719_v18 }
 0x35a   : > { %724 = vrot.lane.b32.xlu0 %v1611_v59, %s1390_s16 }
 0x35b   : > { %v593_v19 = vpop.xlane.xlu1 %592 }
 0x35c   : > { %1128 = vrcp.f32 %v593_v19 }
 0x362   : > { %v1129_v20 = vpop.eup %1128 }
 0x363   : > { %v595_v21 = vmul.f32 %v1129_v20, %v1125_v12 }
 0x365   : > { %991 = vmatmul.msk.f32.vlgmr.msrb.gmra.mxu3 %vm584_vm6, %v595_v21 }
 0x36d   : > { %993 = vmatmul.msk.f32.vlgmr.msra.gmra.mxu3 %vm557_vm5, %v620_v2 }
 0x373   : > { %v753_v22 = vpop.permute.xlu1 %752 }
 0x374   : > { %998 = vmatpush.xpose.msk.msrb.mxu3 %vm557_vm5, %v753_v22 }
 0x377   : > { %999 = vmatmul.msk.f32.vlgmr.msrb.gmra.mxu3 %vm557_vm5, %v751_v23 }
 0x3b9   : > { %v721_v24 = vpop.xlane.xlu0 %720 }
 0x3ba   : > { %1130 = vrcp.f32 %v721_v24 }
 0x3c0   : > { %v1131_v25 = vpop.eup %1130 }
 0x3c1   : > { %v723_v27 = vmul.f32 %v1131_v25, %v1127_v17 }
 0x3cc   : > { %v725_v26 = vpop.permute.xlu0 %724 }
 0x3cd   : > { %745 = vmatpush.msrb.mxu2 %v725_v26 }
 0x3ce   : > { %997 = vmatmul.msk.f32.vlgmr.msrb.gmra.mxu2 %vm584_vm6, %v723_v27 }
 0x3e8   : > { %v616_v28 = vpop.f32.mrf.mxu3 }
 0x3f0   : > { %v644_v29 = vpop.f32.mrf.mxu3 }
 0x3f1   : > { %v647_v30 = vsel %vm584_vm6, %v644_v29, -inf }
 0x3f2   : > { %648 = vmax.xlane.f32.xlu2 %v647_v30 }
 0x3fa   : > { %v775_v31 = vpop.f32.mrf.mxu3 }
 0x3fb   : > { %v778_v32 = vsel %vm584_vm6, %v775_v31, -inf }
 0x3fc   : > { %779 = vmax.xlane.f32.xlu1 %v778_v32 }
 0x415   : > { %659 = vrot.lane.b32.xlu1 %v1611_v59, %s1391_s22 }
 0x451   : > { %v747_v33 = vpop.f32.mrf.mxu2 }
 0x452   : > { %820 = vrot.lane.b32.xlu1 %v747_v33, %s1393_s21 }
 0x465   : > { %v649_v34 = vpop.xlane.xlu2 %648 }
 0x466   : > { %v650_v35 = vsub.f32 %v644_v29, %v649_v34 }
 0x468   : > { %v651_v36 = vmul.f32 1.442695, %v650_v35 }
 0x46a   : > { %1132 = vpow2.f32 %v651_v36 }
 0x46f   : > { %v780_v37 = vpop.xlane.xlu1 %779 }
 0x470   : > { %v1133_v38 = vpop.eup %1132  ;;  %v781_v39 = vsub.f32 %v775_v31, %v780_v37 }
 0x471   : > { %v653_v40 = vsel %vm584_vm6, %v1133_v38, 0.0 }
 0x472   : > { %v782_v41 = vmul.f32 1.442695, %v781_v39  ;;  %654 = vadd.xlane.f32.xlu2 %v653_v40 }
 0x474   : > { %1134 = vpow2.f32 %v782_v41 }
 0x47a   : > { %v1135_v42 = vpop.eup %1134 }
 0x47b   : > { %v784_v43 = vsel %vm584_vm6, %v1135_v42, 0.0 }
 0x47c   : > { %785 = vadd.xlane.f32.xlu2 %v784_v43 }
 0x487   : > { %v660_v44 = vpop.permute.xlu1 %659 }
 0x488   : > { %680 = vmatpush.msrb.mxu0 %v660_v44 }
 0x494   : > { %789 = vrot.lane.b32.xlu2 %v1611_v59, %s1392_s11 }
 0x4c4   : > { %v821_v55 = vpop.permute.xlu1 %820 }
 0x4e5   : > { %v655_v45 = vpop.xlane.xlu2 %654 }
 0x4e6   : > { %1136 = vrcp.f32 %v655_v45 }
 0x4ec   : > { %v1137_v46 = vpop.eup %1136 }
 0x4ed   : > { %v657_v47 = vmul.f32 %v1137_v46, %v1133_v38 }
 0x4ef   : > { %v786_v48 = vpop.xlane.xlu2 %785  ;;  %994 = vmatmul.msk.f32.vlgmr.msrb.gmra.mxu0 %vm584_vm6, %v657_v47 }
 0x4f0   : > { %1138 = vrcp.f32 %v786_v48 }
 0x4f6   : > { %v1139_v49 = vpop.eup %1138 }
 0x4f7   : > { %v788_v50 = vmul.f32 %v1139_v49, %v1135_v42  ;;  %v790_v51 = vpop.permute.xlu2 %789 }
 0x4f8   : > { %810 = vmatpush.msra.mxu0 %v790_v51 }
 0x4f9   : > { %1000 = vmatmul.msk.f32.vlgmr.msra.gmra.mxu0 %vm584_vm6, %v788_v50 }
 0x56c   : > { %v682_v52 = vpop.f32.mrf.mxu0 }
 0x56d   : > { %816 = vrot.lane.b32.xlu0 %v682_v52, %s1394_s17 }
 0x576   : > { %v812_v53 = vpop.f32.mrf.mxu0 }
 0x577   : > { %824 = vrot.lane.b32.xlu2 %v812_v53, %s1395_s23 }
 0x5d1   : > { %v825_v57 = vpop.permute.xlu2 %824 }
 0x5df   : > { %v817_v54 = vpop.permute.xlu0 %816 }
 0x5e0   : > { %v827_v56 = vsel %vm557_vm5, %v616_v28, %v817_v54 }
 0x5e1   : > { %v829_v58 = vsel %vm828_vm7, %v827_v56, %v821_v55 }
 0x5e2   : > { %v831_v59 = vsel %vm830_vm8, %v829_v58, %v825_v57 }
 0x5e3   : > { %833 = vst.msk [vmem:[%s392_s20] sm:$0xff] %vm402_vm0, %v831_v59 }
 0x5e4   : > { %1317 = shalt.err (!%p1314_p6)
}
 0x5e5   : > { %1023 = dma.vmem_to_hbm [thread:$0]  (%p1521_p11), %s850_s3, 128, %s852_s5, %s835_s30  }
 0x5e6 PF: > { %p1053_p7 = scmp.ge.s32.totalorder %s1380_s10, 2  ;;  %s863_s21 = sand.u32 1, %s1360_s27  }
 0x5e7   : > { %p1724_p8 = scmp.ne.s32.totalorder %s1717_s14, 0  ;;  %s864_s17 = scalar_lea.sflag [#allocation8], %s863_s21 }
 0x5e9   : > { %p1042_p9 = pnand %p1053_p7, %p1724_p8 }
 0x5eb   : > { %p1043_p4 = pneg %p1042_p9 }
 0x5ed   : > { %1355 = dma.done.wait (%p1043_p4), %s864_s17, 128  }
 0x5ee   : > { %1357 = vsyncadd (%p1043_p4), %s864_s17, 4294967168  ;;  %s24_s10 = sadd.s32 1, %s1380_s10   ;;  %s1725_s23 = sld [smem:[#allocation20_spill]] }
 0x5ef   : > { %p21_p12 = scmp.ge.s32.totalorder %s24_s10, 4   ;;  %s1726_s29 = sld [smem:[#allocation23_spill]] }
 0x5f0   : > { %s1727_s30 = sld [smem:[#allocation21_spill]]  ;;  %s1729_s27 = smov %s1364_s28 }
 0x5f1   : > { %s1728_s9 = sld [smem:[#allocation22_spill]]  ;;  %23 = sbr.rel (!%p21_p12) target bundleno = 11 (0xb), region = 118 }
 0x5f4   : > { %s1730_s28 = smov %s1725_s23 }
 0x5f6   :  { %870 = vsyncpa [#allocation7], 1 }
 0x5f7   :  { %872 = vsyncpa [#allocation7 + $0x1], 1 }
 0x5f8   :  { %873 = vsyncpa [#allocation10], 1 }
 0x5f9   :  { %874 = vsyncpa [#allocation13], 1 }
 0x5fa   :  { %875 = vsyncpa [#allocation8], 1 }
 0x5fb   :  { %877 = vsyncpa [#allocation8 + $0x1], 1 }

// kernel: tpu_custom_call.1
= control target key start
LH: loop header
LB: loop body
LE: loop exit
PB: predicated region body
PF: predicated region fallthrough
CT: control target
= control target key end

     0   :  { %s1700_s0 = inlined_call_operand.hbm [shape: f32[2,8,64], index: 0, kind: input, shape index: {}]   ;;  %s1701_s1 = inlined_call_operand.hbm [shape: f32[1,64], index: 1, kind: input, shape index: {}]   ;;  %s1702_s2 = inlined_call_operand.vmem [shape: f32[1,64], index: 2, kind: input, shape index: {}]   ;;  %s1703_s3 = inlined_call_operand.hbm [shape: f32[64,64], index: 3, kind: input, shape index: {}]   ;;  %s1704_s4 = inlined_call_operand.vmem [shape: f32[1,64], index: 4, kind: input, shape index: {}]   ;;  %s1705_s5 = inlined_call_operand.hbm [shape: f32[64,64], index: 5, kind: input, shape index: {}]   ;;  %s1706_s6 = inlined_call_operand.hbm [shape: f32[64,64], index: 6, kind: input, shape index: {}]   ;;  %s1707_s7 = inlined_call_operand.vmem [shape: f32[1,64], index: 7, kind: input, shape index: {}]   ;;  %s1708_s8 = inlined_call_operand.hbm [shape: f32[2,8,64], index: 8, kind: output, shape index: {}]  }
   0x1   :  { %1709 = sst [smem:[#allocation20_spill]] %s1701_s1 }
   0x2   :  { %1710 = sst [smem:[#allocation21_spill]] %s1703_s3 }
   0x3   :  { %13 = vsyncpa [#allocation7], 0 }
   0x4   :  { %15 = vsyncpa [#allocation7 + $0x1], 0 }
   0x5   :  { %16 = vsyncpa [#allocation10], 0 }
   0x6   :  { %17 = vsyncpa [#allocation13], 0 }
   0x7   :  { %18 = vsyncpa [#allocation8], 0 }
   0x8   :  { %20 = vsyncpa [#allocation8 + $0x1], 0  ;;  %s1470_s27 = smov 0   ;;  %s1472_s28 = smov 0  }
   0x9   :  { %s1474_s29 = smov 0   ;;  %s1476_s30 = smov 0  }
   0xa   :  { %s1478_s9 = smov 0   ;;  %s1480_s10 = smov 0  }
   0xb LB: > { %s998_s11 = sadd.s32 4294967295, %s1410_s10   ;;  %p1000_p0 = scmp.ge.s32.totalorder %s1410_s10, 1  ;;  %s1410_s10 = sphi %s1480_s10, %s26_s10   ;;  %s1406_s9 = sphi %s1478_s9, %s1723_s9   ;;  %s1402_s30 = sphi %s1476_s30, %s1722_s30   ;;  %s1398_s29 = sphi %s1474_s29, %s1721_s29   ;;  %s1394_s28 = sphi %s1472_s28, %s1720_s28   ;;  %s1390_s27 = sphi %s1470_s27, %s1719_s27  }
   0xc   : > { %p1504_p1 = scmp.eq.s32.totalorder %s998_s11, 0  ;;  %p253_p2 = scmp.lt.s32.totalorder %s1410_s10, 3 }
   0xd   : > { %s1712_s1 = sld [smem:[#allocation20_spill]]  ;;  %p1005_p4 = scmp.ge.s32.totalorder %s1410_s10, 2 }
   0xe   : > { %p1512_p3 = pnand %p1000_p0, %p253_p2  ;;  %s1412_s17 = smov [#allocation9]  }
   0xf   : > { %s267_s18 = sshll.u32 %s1412_s17, 4  ;;  %s296_s22 = sshll.u32 %s1705_s5, 4  ;;  %s268_s18 = int_to_ptr.vmem [resolvable:$true] %s267_s18  ;;  %s297_s22 = int_to_ptr.hbm [resolvable:$true] %s296_s22 }
  0x10   : > { %p1054_p5 = pneg %p1512_p3  ;;  %s1413_s23 = smov [#allocation12]  }
  0x11   : > { %s298_s24 = sshll.u32 %s1413_s23, 4  ;;  %s1715_s3 = sld [smem:[#allocation21_spill]]  ;;  %s299_s24 = int_to_ptr.vmem [resolvable:$true] %s298_s24 }
  0x12   : > { %p1521_p6 = pnand %p1054_p5, %p1504_p1  ;;  %s1414_s14 = smov 128  }
  0x13   : > { %s265_s15 = sshll.u32 %s1712_s1, 4  ;;  %s1415_s17 = smov 8   ;;  %s266_s15 = int_to_ptr.hbm [resolvable:$true] %s265_s15 }
  0x14   : > { %1057 = dma.hbm_to_vmem [thread:$0]  (!%p1521_p6), %s266_s15, 16, %s268_s18, [#allocation10]  }
  0x15   : > { %1063 = dma.hbm_to_vmem [thread:$0]  (!%p1521_p6), %s297_s22, 1024, %s299_s24, [#allocation13], %s1414_s14, %s1414_s14, %s1415_s17  }
  0x16   : > { %s310_s18 = sshll.u32 %s1706_s6, 4  ;;  %s1416_s21 = smov [#allocation11]   ;;  %s311_s18 = int_to_ptr.hbm [resolvable:$true] %s310_s18 }
  0x17   : > { %s279_s13 = sshll.u32 %s1715_s3, 4  ;;  %s281_s23 = sshll.u32 %s1416_s21, 4  ;;  %s280_s13 = int_to_ptr.hbm [resolvable:$true] %s279_s13  ;;  %s282_s23 = int_to_ptr.vmem [resolvable:$true] %s281_s23 }
  0x18   : > { %1060 = dma.hbm_to_vmem [thread:$0]  (!%p1521_p6), %s280_s13, 1024, %s282_s23, [#allocation10], %s1414_s14, %s1414_s14, %s1415_s17  }
  0x19   : > { %s1417_s25 = smov [#allocation14]   ;;  %s45_s22 = sadd.s32 1, %s1406_s9 }
  0x1a   : > { %s312_s26 = sshll.u32 %s1417_s25, 4  ;;  %s999_s24 = sadd.s32 4294967294, %s1410_s10   ;;  %s313_s26 = int_to_ptr.vmem [resolvable:$true] %s312_s26 }
  0x1b   : > { %1066 = dma.hbm_to_vmem [thread:$0]  (!%p1521_p6), %s311_s18, 1024, %s313_s26, [#allocation13], %s1414_s14, %s1414_s14, %s1415_s17  }
  0x1c   : > { %p47_p7 = scmp.ge.s32.totalorder %s45_s22, 2  ;;  %s52_s20 = sadd.s32 1, %s1398_s29 }
  0x1d   : > { %p59_p8 = scmp.ne.s32.totalorder %s1398_s29, %s1394_s28  ;;  %p60_p9 = scmp.eq.s32.totalorder %s1410_s10, 0 }
  0x1e   : > { %s1725_s22 = smov (%p47_p7, %s45_s22), 0  ;;  %p65_p10 = scmp.ne.s32.totalorder %s1394_s28, %s1390_s27 }
  0x1f   : > { %s49_s13 = ssub.s32 %s1406_s9, %s1725_s22  ;;  %p240_p11 = scmp.eq.s32.totalorder %s998_s11, 1 }
  0x20   : > { %p50_p12 = scmp.eq.s32.totalorder %s49_s13, 0  ;;  %p1558_p13 = por %p1504_p1, %p65_p10 }
  0x21   : > { %p1562_p0 = por %p240_p11, %p59_p8  ;;  %p246_p2 = scmp.eq.s32.totalorder %s999_s24, 1 }
  0x22   : > { %s1567_s17 = scalar_select %p50_p12, %s1398_s29, %s52_s20  }
  0x23   : > { %p61_p5 = por %p60_p9, %p59_p8  ;;  %p1569_p6 = por %p246_p2, %p65_p10 }
  0x24   : > { %s329_s18 = sand.u32 1, %s1398_s29   ;;  %s1007_s11 = sshll.u32 %s1406_s9, 3 }
  0x25   : > { %p1079_p7 = scmp.lt.s32.totalorder %s1410_s10, 2  ;;  %s1006_s21 = sshll.u32 %s329_s18, 3 }
  0x26   : > { %s337_s26 = scalar_lea.hbm %s1700_s0, %s1007_s11  ;;  %s333_s1 = scalar_lea.vmem [#allocation6], %s1006_s21 }
  0x27   : > { %s339_s13 = sshll.u32 %s337_s26, 4  ;;  %s341_s3 = sshll.u32 %s333_s1, 4  ;;  %s340_s13 = int_to_ptr.hbm [resolvable:$true] %s339_s13  ;;  %s342_s3 = int_to_ptr.vmem [resolvable:$true] %s341_s3 }
  0x28   : > { %p1068_p11 = pnand %p1079_p7, %p61_p5  ;;  %s330_s24 = scalar_lea.sflag [#allocation7], %s329_s18 }
  0x29   : > { %350 = sbr.rel (%p1512_p3) target bundleno = 1499 (0x5db), region = 52  ;;  %s1582_s20 = sand.u32 (!%p1512_p3), 1, %s1394_s28  }
  0x2a   : > { %1070 = dma.hbm_to_vmem [thread:$0]  (!%p1068_p11), %s340_s13, 128, %s342_s3, %s330_s24  }
  0x2b   : > { %s1009_s23 = sshll.u32 (!%p1512_p3), %s1582_s20, 3  ;;  %s353_s11 = scalar_lea.sflag (!%p1512_p3), [#allocation7], %s1582_s20 }
  0x2c   : > { %s356_s21 = scalar_lea.vmem (!%p1512_p3), [#allocation6], %s1009_s23 }
  0x2e   : > { %1373 = dma.done.wait (%p1558_p13), %s353_s11, 128  }
  0x2f   : > { %1375 = vsyncadd (%p1558_p13), %s353_s11, 4294967168 }
  0x30   : > { %1377 = dma.done.wait (%p1504_p1), [#allocation10], 1040  }
  0x31   : > { %1379 = vsyncadd (%p1504_p1), [#allocation10], 4294966256 }
  0x32   : > { %1381 = dma.done.wait (%p1504_p1), [#allocation13], 2048  }
  0x33   : > { %1383 = vsyncadd (%p1504_p1), [#allocation13], 4294965248  ;;  %vm419_vm0 = vcmask 523264   ;;  %v416_v0 = vld [vmem:[%s356_s21] sm:$0xff]  ;;  %v1418_v2 = vmov 64.0   ;;  %v462_v20 = vld [vmem:[#allocation12 + $0x20] sm:$0xff] }
  0x34   : > { %v420_v1 = vsel %vm419_vm0, %v416_v0, 0.0  ;;  %1150 = vrcp.f32 %v1418_v2  ;;  %v465_v14 = vld [vmem:[#allocation12 + $0x38] sm:$0xff]  ;;  %v464_v16 = vld [vmem:[#allocation12 + $0x30] sm:$0xff]  ;;  %v463_v18 = vld [vmem:[#allocation12 + $0x28] sm:$0xff]  ;;  %vm574_vm5 = vcmask 130048   ;;  %s1419_s19 = smov 96  }
  0x35   : > { %421 = vadd.xlane.f32.xlu0 %v420_v1  ;;  %v496_v15 = vld [vmem:[#allocation14 + $0x38] sm:$0xff]  ;;  %477 = vmatpush.msra.mxu0 %v465_v14  ;;  %v495_v17 = vld [vmem:[#allocation14 + $0x30] sm:$0xff]  ;;  %v494_v19 = vld [vmem:[#allocation14 + $0x28] sm:$0xff]  ;;  %s1420_s18 = smov 112   ;;  %s1421_s13 = smov 80   ;;  %vm601_vm6 = vcmask 64512  }
  0x36   : > { %509 = vmatpush.msra.mxu1 %v496_v15  ;;  %v493_v21 = vld [vmem:[#allocation14 + $0x20] sm:$0xff]  ;;  %v461_v22 = vld [vmem:[#allocation12 + $0x18] sm:$0xff]  ;;  %v460_v25 = vld [vmem:[#allocation12 + $0x10] sm:$0xff]  ;;  %s1422_s24 = smov 32   ;;  %s1423_s11 = smov 16   ;;  %vm845_vm7 = vcmask 261120  }
  0x37   : > { %478 = vmatpush.msra.mxu0 %v464_v16  ;;  %v492_v23 = vld [vmem:[#allocation14 + $0x18] sm:$0xff]  ;;  %v491_v26 = vld [vmem:[#allocation14 + $0x10] sm:$0xff]  ;;  %v459_v28 = vld [vmem:[#allocation12 + $0x8] sm:$0xff]  ;;  %s1424_s21 = smov 48   ;;  %s1031_s1 = sshll.u32 %s1402_s30, 3  ;;  %vm847_vm8 = vcmask 392192  }
  0x38   : > { %510 = vmatpush.msra.mxu1 %v495_v17  ;;  %v536_v24 = vld [vmem:[#allocation11 + $0x38] sm:$0xff]  ;;  %v535_v27 = vld [vmem:[#allocation11 + $0x30] sm:$0xff]  ;;  %v490_v29 = vld [vmem:[#allocation14 + $0x8] sm:$0xff]  ;;  %s864_s16 = scalar_lea.hbm %s1708_s8, %s1031_s1  ;;  %s852_s30 = scalar_lea.sflag [#allocation8], %s1582_s20 }
  0x39   : > { %479 = vmatpush.msra.mxu0 %v463_v18  ;;  %553 = vmatpush.msra.mxu2 %v536_v24  ;;  %v534_v30 = vld [vmem:[#allocation11 + $0x28] sm:$0xff]  ;;  %v458_v31 = vld [vmem:[#allocation12] sm:$0xff]  ;;  %v532_v34 = vld [vmem:[#allocation11 + $0x18] sm:$0xff]  ;;  %s868_s25 = sshll.u32 %s864_s16, 4  ;;  %s869_s25 = int_to_ptr.hbm [resolvable:$true] %s868_s25 }
  0x3a   : > { %v1151_v3 = vpop.eup %1150  ;;  %511 = vmatpush.msra.mxu1 %v494_v19  ;;  %v489_v32 = vld [vmem:[#allocation14] sm:$0xff]  ;;  %v531_v35 = vld [vmem:[#allocation11 + $0x10] sm:$0xff]  ;;  %v530_v37 = vld [vmem:[#allocation11 + $0x8] sm:$0xff]  ;;  %s1334_s26 = sshra.s32 %s869_s25, 4  ;;  %s1335_s26 = int_to_ptr.hbm [resolvable:$true] %s1334_s26 }
  0x3b   : > { %v424_v4 = vmul.f32 64.0, %v1151_v3  ;;  %vm428_vm1 = vweird.f32 %v1151_v3  ;;  %480 = vmatpush.msra.mxu0 %v462_v20  ;;  %554 = vmatpush.msra.mxu2 %v535_v27  ;;  %v533_v33 = vld [vmem:[#allocation11 + $0x20] sm:$0xff]  ;;  %v1146_v47 = vld [vmem:[#allocation9] ss:$0 sm:$0xff]  ;;  %v1147_v50 = vld [vmem:[%s1702_s2] ss:$0 sm:$0xff]  ;;  %p1341_p9 = scmp.lt.s32.totalorder %s1335_s26, %s1708_s8 }
  0x3c   : > { %512 = vmatpush.msra.mxu1 %v493_v21  ;;  %v529_v39 = vld [vmem:[#allocation11] sm:$0xff]  ;;  %v1148_v54 = vld [vmem:[%s1707_s7] ss:$0 sm:$0xff] }
  0x3d   : > { %v425_v5 = vsub.f32 1.0, %v424_v4  ;;  %481 = vmatpush.msra.mxu0 %v461_v22  ;;  %555 = vmatpush.msra.mxu2 %v534_v30  ;;  %v1149_v60 = vld [vmem:[%s1704_s4] ss:$0 sm:$0xff] }
  0x3e   : > { %513 = vmatpush.msra.mxu1 %v492_v23 }
  0x3f   : > { %v426_v6 = vmul.f32 %v1151_v3, %v425_v5  ;;  %482 = vmatpush.msra.mxu0 %v460_v25  ;;  %556 = vmatpush.msra.mxu2 %v533_v33 }
  0x40   : > { %514 = vmatpush.msra.mxu1 %v491_v26 }
  0x41   : > { %v427_v7 = vadd.f32 %v1151_v3, %v426_v6  ;;  %483 = vmatpush.msra.mxu0 %v459_v28  ;;  %557 = vmatpush.msra.mxu2 %v532_v34 }
  0x42   : > { %515 = vmatpush.msra.mxu1 %v490_v29 }
  0x43   : > { %v429_v8 = vsel %vm428_vm1, %v1151_v3, %v427_v7  ;;  %484 = vmatpush.msra.mxu0 %v458_v31  ;;  %558 = vmatpush.msra.mxu2 %v531_v35 }
  0x44   : > { %516 = vmatpush.msra.mxu1 %v489_v32 }
  0x45   : > { %559 = vmatpush.msra.mxu2 %v530_v37 }
  0x47   : > { %560 = vmatpush.msra.mxu2 %v529_v39 }
  0xa8   : > { %v422_v9 = vpop.xlane.xlu0 %421 }
  0xa9   : > { %v430_v10 = vmul.f32 %v429_v8, %v422_v9 }
  0xab   : > { %v1601_v11 = vsub.f32 %v416_v0, %v430_v10 }
  0xad   : > { %v432_v12 = vmul.f32 %v1601_v11, %v1601_v11 }
  0xaf   : > { %v433_v13 = vsel %vm419_vm0, %v432_v12, 0.0 }
  0xb0   : > { %434 = vadd.xlane.f32.xlu0 %v433_v13 }
 0x123   : > { %v435_v36 = vpop.xlane.xlu0 %434 }
 0x124   : > { %v436_v38 = vmul.f32 %v435_v36, %v429_v8 }
 0x126   : > { %v437_v40 = vadd.f32 1e-05, %v436_v38 }
 0x128   : > { %1152 = vrsqrt.f32 %v437_v40  ;;  %vm444_vm3 = vweird.f32 %v437_v40 }
 0x12e   : > { %v1153_v41 = vpop.eup %1152 }
 0x12f   : > { %v439_v42 = vmul.f32 %v1153_v41, %v437_v40  ;;  %vm445_vm2 = vweird.f32 %v1153_v41 }
 0x130   : > { %vm446_vm4 = vmor %vm444_vm3, %vm445_vm2 }
 0x131   : > { %v440_v43 = vmul.f32 %v1153_v41, %v439_v42 }
 0x133   : > { %v441_v44 = vmul.f32 0.5, %v440_v43 }
 0x135   : > { %v442_v45 = vsub.f32 1.5, %v441_v44 }
 0x137   : > { %v443_v46 = vmul.f32 %v1153_v41, %v442_v45 }
 0x139   : > { %v447_v48 = vsel %vm446_vm4, %v1153_v41, %v443_v46 }
 0x13a   : > { %v448_v49 = vmul.f32 %v447_v48, %v1601_v11 }
 0x13c   : > { %v452_v51 = vmul.f32 %v1146_v47, %v448_v49 }
 0x13e   : > { %v456_v52 = vadd.f32 %v1147_v50, %v452_v51 }
 0x140   : > { %457 = vst.msk [vmem:[#allocation2] sm:$0xff] %vm419_vm0, %v456_v52  ;;  %1015 = vmatmul.msk.f32.vlgmr.msra.gmra.mxu0 %vm419_vm0, %v456_v52  ;;  %1016 = vmatmul.msk.f32.vlgmr.msra.gmra.mxu1 %vm419_vm0, %v456_v52 }
 0x147   : > { %v528_v53 = vld [vmem:[#allocation2] sm:$0xff] }
 0x148   : > { %1017 = vmatmul.msk.f32.vlgmr.msra.gmra.mxu2 %vm419_vm0, %v528_v53 }
 0x1bd   : > { %v486_v55 = vpop.f32.mrf.mxu0  ;;  %v518_v56 = vpop.f32.mrf.mxu1 }
 0x1be   : > { %521 = vst.msk [vmem:[#allocation3] sm:$0xff] %vm419_vm0, %v486_v55  ;;  %v519_v57 = vadd.f32 %v1148_v54, %v518_v56 }
 0x1c0   : > { %522 = vst.msk [vmem:[#allocation4] sm:$0xff] %vm419_vm0, %v519_v57 }
 0x1c5   : > { %v571_v58 = vld [vmem:[#allocation3] sm:$0xff] }
 0x1c6   : > { %704 = vrot.lane.b32.xlu0 %v571_v58, %s1419_s19  ;;  %638 = vrot.lane.b32.xlu2 %v571_v58, %s1420_s18 }
 0x1c7   : > { %1018 = vmatpush.xpose.msk.msra.mxu3 %vm574_vm5, %v571_v58  ;;  %v1622_v59 = vld [vmem:[#allocation4] sm:$0xff] }
 0x1cb   : > { %631 = vmatpush.msrb.mxu3 %v1622_v59  ;;  %v562_v61 = vpop.f32.mrf.mxu2 }
 0x1cc   : > { %v563_v62 = vadd.f32 %v1149_v60, %v562_v61 }
 0x1ce   : > { %v565_v63 = vmul.f32 0.25, %v563_v62 }
 0x1d0   : > { %566 = vst.msk [vmem:[#allocation5] sm:$0xff] %vm419_vm0, %v565_v63 }
 0x1d7   : > { %v569_v0 = vld [vmem:[#allocation5] sm:$0xff] }
 0x1d8   : > { %636 = vrot.lane.b32.xlu2 %v569_v0, %s1420_s18  ;;  %1019 = vmatmul.msk.f32.vlgmr.msra.gmra.mxu3 %vm574_vm5, %v569_v0 }
 0x1e0   : > { %702 = vrot.lane.b32.xlu2 %v569_v0, %s1419_s19 }
 0x1e8   : > { %767 = vrot.lane.b32.xlu2 %v569_v0, %s1421_s13 }
 0x220   : > { %v639_v1 = vpop.permute.xlu2 %638 }
 0x221   : > { %1021 = vmatpush.xpose.msk.msra.mxu3 %vm574_vm5, %v639_v1 }
 0x232   : > { %v637_v2 = vpop.permute.xlu2 %636 }
 0x238   : > { %v705_v3 = vpop.permute.xlu0 %704 }
 0x239   : > { %1024 = vmatpush.xpose.msk.msrb.mxu1 %vm574_vm5, %v705_v3 }
 0x23a   : > { %v703_v4 = vpop.permute.xlu2 %702 }
 0x23c   : > { %1025 = vmatmul.msk.f32.vlgmr.msrb.gmra.mxu1 %vm574_vm5, %v703_v4 }
 0x242   : > { %v768_v23 = vpop.permute.xlu2 %767 }
 0x25b   : > { %v598_v5 = vpop.f32.mrf.mxu3 }
 0x25c   : > { %v602_v6 = vsel %vm601_vm6, %v598_v5, -inf }
 0x25d   : > { %603 = vmax.xlane.f32.xlu1 %v602_v6 }
 0x2b9   : > { %v727_v7 = vpop.f32.mrf.mxu1 }
 0x2ba   : > { %v730_v8 = vsel %vm601_vm6, %v727_v7, -inf }
 0x2bb   : > { %731 = vmax.xlane.f32.xlu0 %v730_v8 }
 0x2d0   : > { %v604_v9 = vpop.xlane.xlu1 %603 }
 0x2d1   : > { %v605_v10 = vsub.f32 %v598_v5, %v604_v9 }
 0x2d3   : > { %v606_v11 = vmul.f32 1.442695, %v605_v10 }
 0x2d5   : > { %1154 = vpow2.f32 %v606_v11 }
 0x2db   : > { %v1155_v12 = vpop.eup %1154 }
 0x2dc   : > { %v608_v13 = vsel %vm601_vm6, %v1155_v12, 0.0 }
 0x2dd   : > { %609 = vadd.xlane.f32.xlu1 %v608_v13 }
 0x2f6   : > { %769 = vrot.lane.b32.xlu1 %v571_v58, %s1421_s13 }
 0x32e   : > { %v732_v14 = vpop.xlane.xlu0 %731 }
 0x32f   : > { %v733_v15 = vsub.f32 %v727_v7, %v732_v14 }
 0x331   : > { %v734_v16 = vmul.f32 1.442695, %v733_v15 }
 0x333   : > { %1156 = vpow2.f32 %v734_v16 }
 0x339   : > { %v1157_v17 = vpop.eup %1156 }
 0x33a   : > { %v736_v18 = vsel %vm601_vm6, %v1157_v17, 0.0 }
 0x33b   : > { %737 = vadd.xlane.f32.xlu0 %v736_v18 }
 0x34f   : > { %741 = vrot.lane.b32.xlu0 %v1622_v59, %s1419_s19  ;;  %s409_s19 = scalar_lea.vmem [#allocation15], %s1009_s23 }
 0x350   : > { %v610_v19 = vpop.xlane.xlu1 %609 }
 0x351   : > { %1158 = vrcp.f32 %v610_v19 }
 0x357   : > { %v1159_v20 = vpop.eup %1158 }
 0x358   : > { %v612_v21 = vmul.f32 %v1159_v20, %v1155_v12 }
 0x35a   : > { %1020 = vmatmul.msk.f32.vlgmr.msrb.gmra.mxu3 %vm601_vm6, %v612_v21 }
 0x362   : > { %1022 = vmatmul.msk.f32.vlgmr.msra.gmra.mxu3 %vm574_vm5, %v637_v2 }
 0x368   : > { %v770_v22 = vpop.permute.xlu1 %769 }
 0x369   : > { %1027 = vmatpush.xpose.msk.msrb.mxu3 %vm574_vm5, %v770_v22 }
 0x36c   : > { %1028 = vmatmul.msk.f32.vlgmr.msrb.gmra.mxu3 %vm574_vm5, %v768_v23 }
 0x3ae   : > { %v738_v24 = vpop.xlane.xlu0 %737 }
 0x3af   : > { %1160 = vrcp.f32 %v738_v24 }
 0x3b5   : > { %v1161_v25 = vpop.eup %1160 }
 0x3b6   : > { %v740_v27 = vmul.f32 %v1161_v25, %v1157_v17 }
 0x3c1   : > { %v742_v26 = vpop.permute.xlu0 %741 }
 0x3c2   : > { %762 = vmatpush.msrb.mxu2 %v742_v26 }
 0x3c3   : > { %1026 = vmatmul.msk.f32.vlgmr.msrb.gmra.mxu2 %vm601_vm6, %v740_v27 }
 0x3dd   : > { %v633_v28 = vpop.f32.mrf.mxu3 }
 0x3e5   : > { %v661_v29 = vpop.f32.mrf.mxu3 }
 0x3e6   : > { %v664_v30 = vsel %vm601_vm6, %v661_v29, -inf }
 0x3e7   : > { %665 = vmax.xlane.f32.xlu2 %v664_v30 }
 0x3ef   : > { %v792_v31 = vpop.f32.mrf.mxu3 }
 0x3f0   : > { %v795_v32 = vsel %vm601_vm6, %v792_v31, -inf }
 0x3f1   : > { %796 = vmax.xlane.f32.xlu1 %v795_v32 }
 0x40a   : > { %676 = vrot.lane.b32.xlu1 %v1622_v59, %s1420_s18  ;;  %s866_s18 = sshll.u32 %s409_s19, 4  ;;  %s867_s18 = int_to_ptr.vmem [resolvable:$true] %s866_s18 }
 0x446   : > { %v764_v33 = vpop.f32.mrf.mxu2 }
 0x447   : > { %837 = vrot.lane.b32.xlu1 %v764_v33, %s1422_s24 }
 0x45a   : > { %v666_v34 = vpop.xlane.xlu2 %665 }
 0x45b   : > { %v667_v35 = vsub.f32 %v661_v29, %v666_v34 }
 0x45d   : > { %v668_v36 = vmul.f32 1.442695, %v667_v35 }
 0x45f   : > { %1162 = vpow2.f32 %v668_v36 }
 0x464   : > { %v797_v37 = vpop.xlane.xlu1 %796 }
 0x465   : > { %v1163_v38 = vpop.eup %1162  ;;  %v798_v39 = vsub.f32 %v792_v31, %v797_v37 }
 0x466   : > { %v670_v40 = vsel %vm601_vm6, %v1163_v38, 0.0 }
 0x467   : > { %v799_v41 = vmul.f32 1.442695, %v798_v39  ;;  %671 = vadd.xlane.f32.xlu2 %v670_v40 }
 0x469   : > { %1164 = vpow2.f32 %v799_v41 }
 0x46f   : > { %v1165_v42 = vpop.eup %1164 }
 0x470   : > { %v801_v43 = vsel %vm601_vm6, %v1165_v42, 0.0 }
 0x471   : > { %802 = vadd.xlane.f32.xlu2 %v801_v43 }
 0x47c   : > { %v677_v44 = vpop.permute.xlu1 %676 }
 0x47d   : > { %697 = vmatpush.msrb.mxu0 %v677_v44 }
 0x489   : > { %806 = vrot.lane.b32.xlu2 %v1622_v59, %s1421_s13  ;;  %s1336_s13 = scalar_lea.hbm %s1335_s26, 8 }
 0x48a   : > { %p1337_p1 = scmp.ne.s32.totalorder %s1335_s26, %s1336_s13 }
 0x48c   : > { %p1338_p3 = pnand %p1337_p1, %p1562_p0 }
 0x48e   : > { %p1339_p8 = pneg %p1338_p3 }
 0x4b9   : > { %v838_v55 = vpop.permute.xlu1 %837 }
 0x4da   : > { %v672_v45 = vpop.xlane.xlu2 %671 }
 0x4db   : > { %1166 = vrcp.f32 %v672_v45 }
 0x4e1   : > { %v1167_v46 = vpop.eup %1166 }
 0x4e2   : > { %v674_v47 = vmul.f32 %v1167_v46, %v1163_v38 }
 0x4e4   : > { %v803_v48 = vpop.xlane.xlu2 %802  ;;  %1023 = vmatmul.msk.f32.vlgmr.msrb.gmra.mxu0 %vm601_vm6, %v674_v47 }
 0x4e5   : > { %1168 = vrcp.f32 %v803_v48 }
 0x4eb   : > { %v1169_v49 = vpop.eup %1168 }
 0x4ec   : > { %v805_v50 = vmul.f32 %v1169_v49, %v1165_v42  ;;  %v807_v51 = vpop.permute.xlu2 %806 }
 0x4ed   : > { %827 = vmatpush.msra.mxu0 %v807_v51 }
 0x4ee   : > { %1029 = vmatmul.msk.f32.vlgmr.msra.gmra.mxu0 %vm601_vm6, %v805_v50 }
 0x561   : > { %v699_v52 = vpop.f32.mrf.mxu0 }
 0x562   : > { %833 = vrot.lane.b32.xlu0 %v699_v52, %s1423_s11  ;;  %s1340_s11 = scalar_lea.hbm %s1708_s8, 16 }
 0x563   : > { %p1342_p10 = scmp.lt.s32.totalorder %s1340_s11, %s1336_s13 }
 0x565   : > { %p1343_p12 = por %p1342_p10, %p1341_p9 }
 0x567   : > { %p1344_p13 = pnand %p1343_p12, %p1339_p8 }
 0x56b   : > { %v829_v53 = vpop.f32.mrf.mxu0 }
 0x56c   : > { %841 = vrot.lane.b32.xlu2 %v829_v53, %s1424_s21 }
 0x5c6   : > { %v842_v57 = vpop.permute.xlu2 %841 }
 0x5d4   : > { %v834_v54 = vpop.permute.xlu0 %833 }
 0x5d5   : > { %v844_v56 = vsel %vm574_vm5, %v633_v28, %v834_v54 }
 0x5d6   : > { %v846_v58 = vsel %vm845_vm7, %v844_v56, %v838_v55 }
 0x5d7   : > { %v848_v59 = vsel %vm847_vm8, %v846_v58, %v842_v57 }
 0x5d8   : > { %850 = vst.msk [vmem:[%s409_s19] sm:$0xff] %vm419_vm0, %v848_v59 }
 0x5d9   : > { %1347 = shalt.err (!%p1344_p13)
}
 0x5da   : > { %1052 = dma.vmem_to_hbm [thread:$0]  (%p1562_p0), %s867_s18, 128, %s869_s25, %s852_s30  }
 0x5db PF: > { %s880_s20 = sand.u32 1, %s1390_s27   ;;  %p1072_p2 = pnand %p1005_p4, %p1569_p6 }
 0x5dc   : > { %s881_s3 = scalar_lea.sflag [#allocation8], %s880_s20 }
 0x5dd   : > { %p1073_p5 = pneg %p1072_p2 }
 0x5df   : > { %1385 = dma.done.wait (%p1073_p5), %s881_s3, 128  }
 0x5e0   : > { %1387 = vsyncadd (%p1073_p5), %s881_s3, 4294967168  ;;  %s26_s10 = sadd.s32 1, %s1410_s10   ;;  %s1719_s27 = smov %s1394_s28 }
 0x5e1   : > { %p23_p7 = scmp.ge.s32.totalorder %s26_s10, 4   ;;  %s1720_s28 = smov %s1398_s29 }
 0x5e2   : > { %s1721_s29 = smov %s1567_s17  ;;  %s1722_s30 = smov %s1406_s9 }
 0x5e3   : > { %s1723_s9 = smov %s1725_s22  ;;  %25 = sbr.rel (!%p23_p7) target bundleno = 11 (0xb), region = 125 }
 0x5e8   :  { %887 = vsyncpa [#allocation7], 1 }
 0x5e9   :  { %889 = vsyncpa [#allocation7 + $0x1], 1 }
 0x5ea   :  { %890 = vsyncpa [#allocation10], 1 }
 0x5eb   :  { %891 = vsyncpa [#allocation13], 1 }
 0x5ec   :  { %892 = vsyncpa [#allocation8], 1 }
 0x5ed   :  { %894 = vsyncpa [#allocation8 + $0x1], 1 }

</bundles_post_ra>
